<compile_context>
chip_gen: v7x
topology: tpu7x:2x2x1
jax: 0.10.0
libtpu: 0.0.40
codegen_flags: <defaults>
</compile_context>

<pallas_src>
import jax
import jax.numpy as jnp
from jax.experimental import pallas as pl
from jax.experimental.pallas import tpu as pltpu


# --------------------------- in-kernel helpers --------------------------------

def _mm(a, b):
    return jnp.dot(a, b, preferred_element_type=jnp.float32,
                   precision=jax.lax.Precision.HIGHEST)


def _cmul_left(fr, fi, xr, xi):
    """(Fr + i*Fi) @ (Xr + i*Xi) -> (real, imag)."""
    return _mm(fr, xr) - _mm(fi, xi), _mm(fr, xi) + _mm(fi, xr)


def _cmul_right(xr, xi, fr, fi):
    """(Xr + i*Xi) @ (Fr + i*Fi) -> (real, imag)."""
    return _mm(xr, fr) - _mm(xi, fi), _mm(xr, fi) + _mm(xi, fr)


# --------------------------- Pallas kernel ------------------------------------

def _dc_kspace_kernel(x_ref, k0_ref, m_ref, fh_ref, fw_ref, gh_ref, gw_ref, o_ref):
    x = x_ref[0]        # (2, H, W): channel 0 = real, 1 = imag
    k0 = k0_ref[0]
    m = m_ref[0]
    fhr, fhi = fh_ref[0], fh_ref[1]
    fwr, fwi = fw_ref[0], fw_ref[1]
    ghr, ghi = gh_ref[0], gh_ref[1]
    gwr, gwi = gw_ref[0], gw_ref[1]

    # forward (unnormalized) 2D DFT:  K = F_H @ X @ F_W
    tr, ti = _cmul_left(fhr, fhi, x[0], x[1])
    kr, ki = _cmul_right(tr, ti, fwr, fwi)

    # data consistency in k-space:  out = (1 - mask) * k + mask * k0   (per channel)
    or_ = (1.0 - m[0]) * kr + m[0] * k0[0]
    oi_ = (1.0 - m[1]) * ki + m[1] * k0[1]

    # inverse 2D DFT (1/(H*W) folded into G):  R = G_H @ OUT @ G_W
    sr, si = _cmul_left(ghr, ghi, or_, oi_)
    rr, ri = _cmul_right(sr, si, gwr, gwi)

    o_ref[0, 0, :, :] = rr
    o_ref[0, 1, :, :] = ri


# --------------------------- wrapper -------------------------------------------

def _dft_mats(n, inverse):
    """Stacked (2, n, n) = (real, imag) DFT matrix; inverse = conj(F)/n."""
    k = jnp.arange(n, dtype=jnp.int32)
    idx = (k[:, None] * k[None, :]) % n                   # exact phase index
    ang = (2.0 * jnp.pi / n) * idx.astype(jnp.float32)
    if inverse:
        return jnp.stack([jnp.cos(ang) / n, jnp.sin(ang) / n]).astype(jnp.float32)
    return jnp.stack([jnp.cos(ang), -jnp.sin(ang)]).astype(jnp.float32)


def data_consistency_kspace(x, k0, mask):
    """Pallas forward of DataConsistencyInKspace.perform(x, k0, mask); NCHW with C=2."""
    n, c, h, w = x.shape
    assert c == 2, "channel dim must be (real, imag)"
    fh = _dft_mats(h, inverse=False)
    fw = _dft_mats(w, inverse=False)
    gh = _dft_mats(h, inverse=True)
    gw = _dft_mats(w, inverse=True)

    img_spec = pl.BlockSpec((1, 2, h, w), lambda i: (i, 0, 0, 0))
    return pl.pallas_call(
        _dc_kspace_kernel,
        out_shape=jax.ShapeDtypeStruct((n, 2, h, w), jnp.float32),
        grid=(n,),
        in_specs=[img_spec, img_spec, img_spec,
                  pl.BlockSpec((2, h, h), lambda i: (0, 0, 0)),
                  pl.BlockSpec((2, w, w), lambda i: (0, 0, 0)),
                  pl.BlockSpec((2, h, h), lambda i: (0, 0, 0)),
                  pl.BlockSpec((2, w, w), lambda i: (0, 0, 0))],
        out_specs=img_spec,
        compiler_params=pltpu.CompilerParams(
            dimension_semantics=("parallel",)),
    )(x.astype(jnp.float32), k0.astype(jnp.float32), mask.astype(jnp.float32),
      fh, fw, gh, gw)


# --------------------------- pure-jnp reference --------------------------------

def _reference(x, k0, mask):
    """torch.fft(x,2) unnormalized, DC mix, torch.ifft with 1/(H*W)."""
    xc = x[:, 0] + 1j * x[:, 1]
    kc = jnp.fft.fft2(xc)
    k2 = jnp.stack([kc.real, kc.imag], axis=1)
    out = (1.0 - mask) * k2 + mask * k0
    oc = out[:, 0] + 1j * out[:, 1]
    rc = jnp.fft.ifft2(oc)
    return jnp.stack([rc.real, rc.imag], axis=1).astype(jnp.float32)


# --------------------------- demo ----------------------------------------------

if __name__ == "__main__":
    key = jax.random.PRNGKey(0)
    kx, kk, km = jax.random.split(key, 3)

    N, C, H, W = 2, 2, 16, 16
    x = jax.random.normal(kx, (N, C, H, W), jnp.float32)
    k0 = jax.random.normal(kk, (N, C, H, W), jnp.float32)
    m1 = (jax.random.uniform(km, (N, 1, H, W)) < 0.5).astype(jnp.float32)
    mask = jnp.concatenate([m1, m1], axis=1)     # same sampling mask for real/imag

    fwd = jax.jit(data_consistency_kspace)
    out = jax.block_until_ready(fwd(x, k0, mask))

    assert out.shape == (N, C, H, W)
    assert bool(jnp.all(jnp.isfinite(out)))
    ref = _reference(x, k0, mask)
    max_err = float(jnp.max(jnp.abs(out - ref)))
    assert max_err < 5e-2, f"mismatch vs jnp.fft reference: {max_err}"
    print("KERNEL_OK")
</pallas_src>

<mosaic_0001>
module attributes {stable_mosaic.version = 11 : i64} {
  func.func @_dc_kspace_kernel(%arg0: i32, %arg1: memref<1x2x16x16xf32, #tpu.memory_space<vmem>>, %arg2: memref<1x2x16x16xf32, #tpu.memory_space<vmem>>, %arg3: memref<1x2x16x16xf32, #tpu.memory_space<vmem>>, %arg4: memref<2x16x16xf32, #tpu.memory_space<vmem>>, %arg5: memref<2x16x16xf32, #tpu.memory_space<vmem>>, %arg6: memref<2x16x16xf32, #tpu.memory_space<vmem>>, %arg7: memref<2x16x16xf32, #tpu.memory_space<vmem>>, %arg8: memref<1x2x16x16xf32, #tpu.memory_space<vmem>>) attributes {dimension_semantics = [#tpu.dimension_semantics<parallel>], iteration_bounds = array<i64: 2>, scalar_prefetch = 0 : i64, scratch_operands = 0 : i64, tpu.core_type = #tpu.core_type<tc>, window_params = [{transform_indices = @transform_0, window_bounds = array<i64: 1, 2, 16, 16>}, {transform_indices = @transform_1, window_bounds = array<i64: 1, 2, 16, 16>}, {transform_indices = @transform_2, window_bounds = array<i64: 1, 2, 16, 16>}, {pipeline_mode = #tpu.pipeline_mode<synchronous>, transform_indices = @transform_3, window_bounds = array<i64: 2, 16, 16>}, {pipeline_mode = #tpu.pipeline_mode<synchronous>, transform_indices = @transform_4, window_bounds = array<i64: 2, 16, 16>}, {pipeline_mode = #tpu.pipeline_mode<synchronous>, transform_indices = @transform_5, window_bounds = array<i64: 2, 16, 16>}, {pipeline_mode = #tpu.pipeline_mode<synchronous>, transform_indices = @transform_6, window_bounds = array<i64: 2, 16, 16>}, {transform_indices = @transform_7, window_bounds = array<i64: 1, 2, 16, 16>}]} {
    %c0 = arith.constant 0 : index
    %c0_0 = arith.constant 0 : index
    %c0_1 = arith.constant 0 : index
    %c0_2 = arith.constant 0 : index
    %0 = vector.load %arg1[%c0, %c0_0, %c0_1, %c0_2] : memref<1x2x16x16xf32, #tpu.memory_space<vmem>>, vector<1x2x16x16xf32>
    %1 = vector.shape_cast %0 : vector<1x2x16x16xf32> to vector<2x16x16xf32>
    %c0_3 = arith.constant 0 : index
    %c0_4 = arith.constant 0 : index
    %c0_5 = arith.constant 0 : index
    %c0_6 = arith.constant 0 : index
    %2 = vector.load %arg2[%c0_3, %c0_4, %c0_5, %c0_6] : memref<1x2x16x16xf32, #tpu.memory_space<vmem>>, vector<1x2x16x16xf32>
    %3 = vector.shape_cast %2 : vector<1x2x16x16xf32> to vector<2x16x16xf32>
    %c0_7 = arith.constant 0 : index
    %c0_8 = arith.constant 0 : index
    %c0_9 = arith.constant 0 : index
    %c0_10 = arith.constant 0 : index
    %4 = vector.load %arg3[%c0_7, %c0_8, %c0_9, %c0_10] : memref<1x2x16x16xf32, #tpu.memory_space<vmem>>, vector<1x2x16x16xf32>
    %5 = vector.shape_cast %4 : vector<1x2x16x16xf32> to vector<2x16x16xf32>
    %c0_11 = arith.constant 0 : index
    %c0_12 = arith.constant 0 : index
    %c0_13 = arith.constant 0 : index
    %6 = vector.load %arg4[%c0_11, %c0_12, %c0_13] : memref<2x16x16xf32, #tpu.memory_space<vmem>>, vector<1x16x16xf32>
    %7 = vector.shape_cast %6 : vector<1x16x16xf32> to vector<16x16xf32>
    %c1 = arith.constant 1 : index
    %c0_14 = arith.constant 0 : index
    %c0_15 = arith.constant 0 : index
    %8 = vector.load %arg4[%c1, %c0_14, %c0_15] : memref<2x16x16xf32, #tpu.memory_space<vmem>>, vector<1x16x16xf32>
    %9 = vector.shape_cast %8 : vector<1x16x16xf32> to vector<16x16xf32>
    %c0_16 = arith.constant 0 : index
    %c0_17 = arith.constant 0 : index
    %c0_18 = arith.constant 0 : index
    %10 = vector.load %arg5[%c0_16, %c0_17, %c0_18] : memref<2x16x16xf32, #tpu.memory_space<vmem>>, vector<1x16x16xf32>
    %11 = vector.shape_cast %10 : vector<1x16x16xf32> to vector<16x16xf32>
    %c1_19 = arith.constant 1 : index
    %c0_20 = arith.constant 0 : index
    %c0_21 = arith.constant 0 : index
    %12 = vector.load %arg5[%c1_19, %c0_20, %c0_21] : memref<2x16x16xf32, #tpu.memory_space<vmem>>, vector<1x16x16xf32>
    %13 = vector.shape_cast %12 : vector<1x16x16xf32> to vector<16x16xf32>
    %c0_22 = arith.constant 0 : index
    %c0_23 = arith.constant 0 : index
    %c0_24 = arith.constant 0 : index
    %14 = vector.load %arg6[%c0_22, %c0_23, %c0_24] : memref<2x16x16xf32, #tpu.memory_space<vmem>>, vector<1x16x16xf32>
    %15 = vector.shape_cast %14 : vector<1x16x16xf32> to vector<16x16xf32>
    %c1_25 = arith.constant 1 : index
    %c0_26 = arith.constant 0 : index
    %c0_27 = arith.constant 0 : index
    %16 = vector.load %arg6[%c1_25, %c0_26, %c0_27] : memref<2x16x16xf32, #tpu.memory_space<vmem>>, vector<1x16x16xf32>
    %17 = vector.shape_cast %16 : vector<1x16x16xf32> to vector<16x16xf32>
    %c0_28 = arith.constant 0 : index
    %c0_29 = arith.constant 0 : index
    %c0_30 = arith.constant 0 : index
    %18 = vector.load %arg7[%c0_28, %c0_29, %c0_30] : memref<2x16x16xf32, #tpu.memory_space<vmem>>, vector<1x16x16xf32>
    %19 = vector.shape_cast %18 : vector<1x16x16xf32> to vector<16x16xf32>
    %c1_31 = arith.constant 1 : index
    %c0_32 = arith.constant 0 : index
    %c0_33 = arith.constant 0 : index
    %20 = vector.load %arg7[%c1_31, %c0_32, %c0_33] : memref<2x16x16xf32, #tpu.memory_space<vmem>>, vector<1x16x16xf32>
    %21 = vector.shape_cast %20 : vector<1x16x16xf32> to vector<16x16xf32>
    %22 = vector.extract_strided_slice %1 {offsets = [0, 0, 0], sizes = [1, 16, 16], strides = [1, 1, 1]} : vector<2x16x16xf32> to vector<1x16x16xf32>
    %23 = vector.shape_cast %22 : vector<1x16x16xf32> to vector<16x16xf32>
    %24 = vector.extract_strided_slice %1 {offsets = [1, 0, 0], sizes = [1, 16, 16], strides = [1, 1, 1]} : vector<2x16x16xf32> to vector<1x16x16xf32>
    %25 = vector.shape_cast %24 : vector<1x16x16xf32> to vector<16x16xf32>
    %cst = arith.constant dense<0.000000e+00> : vector<16x16xf32>
    %26 = tpu.matmul %7, %23, %cst {dimension_numbers = #tpu.dot_dimension_numbers<[1], [0], [0], [1], [0, 0, 1, 1], [], []>, precision = #tpu.contract_precision<fp32>} : vector<16x16xf32>, vector<16x16xf32>, vector<16x16xf32> -> vector<16x16xf32>
    %cst_34 = arith.constant dense<0.000000e+00> : vector<16x16xf32>
    %27 = tpu.matmul %9, %25, %cst_34 {dimension_numbers = #tpu.dot_dimension_numbers<[1], [0], [0], [1], [0, 0, 1, 1], [], []>, precision = #tpu.contract_precision<fp32>} : vector<16x16xf32>, vector<16x16xf32>, vector<16x16xf32> -> vector<16x16xf32>
    %28 = arith.subf %26, %27 : vector<16x16xf32>
    %cst_35 = arith.constant dense<0.000000e+00> : vector<16x16xf32>
    %29 = tpu.matmul %7, %25, %cst_35 {dimension_numbers = #tpu.dot_dimension_numbers<[1], [0], [0], [1], [0, 0, 1, 1], [], []>, precision = #tpu.contract_precision<fp32>} : vector<16x16xf32>, vector<16x16xf32>, vector<16x16xf32> -> vector<16x16xf32>
    %cst_36 = arith.constant dense<0.000000e+00> : vector<16x16xf32>
    %30 = tpu.matmul %9, %23, %cst_36 {dimension_numbers = #tpu.dot_dimension_numbers<[1], [0], [0], [1], [0, 0, 1, 1], [], []>, precision = #tpu.contract_precision<fp32>} : vector<16x16xf32>, vector<16x16xf32>, vector<16x16xf32> -> vector<16x16xf32>
    %31 = arith.addf %29, %30 : vector<16x16xf32>
    %cst_37 = arith.constant dense<0.000000e+00> : vector<16x16xf32>
    %32 = tpu.matmul %28, %11, %cst_37 {dimension_numbers = #tpu.dot_dimension_numbers<[1], [0], [0], [1], [0, 0, 1, 1], [], []>, precision = #tpu.contract_precision<fp32>} : vector<16x16xf32>, vector<16x16xf32>, vector<16x16xf32> -> vector<16x16xf32>
    %cst_38 = arith.constant dense<0.000000e+00> : vector<16x16xf32>
    %33 = tpu.matmul %31, %13, %cst_38 {dimension_numbers = #tpu.dot_dimension_numbers<[1], [0], [0], [1], [0, 0, 1, 1], [], []>, precision = #tpu.contract_precision<fp32>} : vector<16x16xf32>, vector<16x16xf32>, vector<16x16xf32> -> vector<16x16xf32>
    %34 = arith.subf %32, %33 : vector<16x16xf32>
    %cst_39 = arith.constant dense<0.000000e+00> : vector<16x16xf32>
    %35 = tpu.matmul %28, %13, %cst_39 {dimension_numbers = #tpu.dot_dimension_numbers<[1], [0], [0], [1], [0, 0, 1, 1], [], []>, precision = #tpu.contract_precision<fp32>} : vector<16x16xf32>, vector<16x16xf32>, vector<16x16xf32> -> vector<16x16xf32>
    %cst_40 = arith.constant dense<0.000000e+00> : vector<16x16xf32>
    %36 = tpu.matmul %31, %11, %cst_40 {dimension_numbers = #tpu.dot_dimension_numbers<[1], [0], [0], [1], [0, 0, 1, 1], [], []>, precision = #tpu.contract_precision<fp32>} : vector<16x16xf32>, vector<16x16xf32>, vector<16x16xf32> -> vector<16x16xf32>
    %37 = arith.addf %35, %36 : vector<16x16xf32>
    %38 = vector.extract_strided_slice %5 {offsets = [0, 0, 0], sizes = [1, 16, 16], strides = [1, 1, 1]} : vector<2x16x16xf32> to vector<1x16x16xf32>
    %39 = vector.shape_cast %38 : vector<1x16x16xf32> to vector<16x16xf32>
    %cst_41 = arith.constant 1.000000e+00 : f32
    %40 = vector.broadcast %cst_41 : f32 to vector<16x16xf32>
    %41 = arith.subf %40, %39 : vector<16x16xf32>
    %42 = arith.mulf %41, %34 : vector<16x16xf32>
    %43 = vector.extract_strided_slice %5 {offsets = [0, 0, 0], sizes = [1, 16, 16], strides = [1, 1, 1]} : vector<2x16x16xf32> to vector<1x16x16xf32>
    %44 = vector.shape_cast %43 : vector<1x16x16xf32> to vector<16x16xf32>
    %45 = vector.extract_strided_slice %3 {offsets = [0, 0, 0], sizes = [1, 16, 16], strides = [1, 1, 1]} : vector<2x16x16xf32> to vector<1x16x16xf32>
    %46 = vector.shape_cast %45 : vector<1x16x16xf32> to vector<16x16xf32>
    %47 = arith.mulf %44, %46 : vector<16x16xf32>
    %48 = arith.addf %42, %47 : vector<16x16xf32>
    %49 = vector.extract_strided_slice %5 {offsets = [1, 0, 0], sizes = [1, 16, 16], strides = [1, 1, 1]} : vector<2x16x16xf32> to vector<1x16x16xf32>
    %50 = vector.shape_cast %49 : vector<1x16x16xf32> to vector<16x16xf32>
    %cst_42 = arith.constant 1.000000e+00 : f32
    %51 = vector.broadcast %cst_42 : f32 to vector<16x16xf32>
    %52 = arith.subf %51, %50 : vector<16x16xf32>
    %53 = arith.mulf %52, %37 : vector<16x16xf32>
    %54 = vector.extract_strided_slice %5 {offsets = [1, 0, 0], sizes = [1, 16, 16], strides = [1, 1, 1]} : vector<2x16x16xf32> to vector<1x16x16xf32>
    %55 = vector.shape_cast %54 : vector<1x16x16xf32> to vector<16x16xf32>
    %56 = vector.extract_strided_slice %3 {offsets = [1, 0, 0], sizes = [1, 16, 16], strides = [1, 1, 1]} : vector<2x16x16xf32> to vector<1x16x16xf32>
    %57 = vector.shape_cast %56 : vector<1x16x16xf32> to vector<16x16xf32>
    %58 = arith.mulf %55, %57 : vector<16x16xf32>
    %59 = arith.addf %53, %58 : vector<16x16xf32>
    %cst_43 = arith.constant dense<0.000000e+00> : vector<16x16xf32>
    %60 = tpu.matmul %15, %48, %cst_43 {dimension_numbers = #tpu.dot_dimension_numbers<[1], [0], [0], [1], [0, 0, 1, 1], [], []>, precision = #tpu.contract_precision<fp32>} : vector<16x16xf32>, vector<16x16xf32>, vector<16x16xf32> -> vector<16x16xf32>
    %cst_44 = arith.constant dense<0.000000e+00> : vector<16x16xf32>
    %61 = tpu.matmul %17, %59, %cst_44 {dimension_numbers = #tpu.dot_dimension_numbers<[1], [0], [0], [1], [0, 0, 1, 1], [], []>, precision = #tpu.contract_precision<fp32>} : vector<16x16xf32>, vector<16x16xf32>, vector<16x16xf32> -> vector<16x16xf32>
    %62 = arith.subf %60, %61 : vector<16x16xf32>
    %cst_45 = arith.constant dense<0.000000e+00> : vector<16x16xf32>
    %63 = tpu.matmul %15, %59, %cst_45 {dimension_numbers = #tpu.dot_dimension_numbers<[1], [0], [0], [1], [0, 0, 1, 1], [], []>, precision = #tpu.contract_precision<fp32>} : vector<16x16xf32>, vector<16x16xf32>, vector<16x16xf32> -> vector<16x16xf32>
    %cst_46 = arith.constant dense<0.000000e+00> : vector<16x16xf32>
    %64 = tpu.matmul %17, %48, %cst_46 {dimension_numbers = #tpu.dot_dimension_numbers<[1], [0], [0], [1], [0, 0, 1, 1], [], []>, precision = #tpu.contract_precision<fp32>} : vector<16x16xf32>, vector<16x16xf32>, vector<16x16xf32> -> vector<16x16xf32>
    %65 = arith.addf %63, %64 : vector<16x16xf32>
    %cst_47 = arith.constant dense<0.000000e+00> : vector<16x16xf32>
    %66 = tpu.matmul %62, %19, %cst_47 {dimension_numbers = #tpu.dot_dimension_numbers<[1], [0], [0], [1], [0, 0, 1, 1], [], []>, precision = #tpu.contract_precision<fp32>} : vector<16x16xf32>, vector<16x16xf32>, vector<16x16xf32> -> vector<16x16xf32>
    %cst_48 = arith.constant dense<0.000000e+00> : vector<16x16xf32>
    %67 = tpu.matmul %65, %21, %cst_48 {dimension_numbers = #tpu.dot_dimension_numbers<[1], [0], [0], [1], [0, 0, 1, 1], [], []>, precision = #tpu.contract_precision<fp32>} : vector<16x16xf32>, vector<16x16xf32>, vector<16x16xf32> -> vector<16x16xf32>
    %68 = arith.subf %66, %67 : vector<16x16xf32>
    %cst_49 = arith.constant dense<0.000000e+00> : vector<16x16xf32>
    %69 = tpu.matmul %62, %21, %cst_49 {dimension_numbers = #tpu.dot_dimension_numbers<[1], [0], [0], [1], [0, 0, 1, 1], [], []>, precision = #tpu.contract_precision<fp32>} : vector<16x16xf32>, vector<16x16xf32>, vector<16x16xf32> -> vector<16x16xf32>
    %cst_50 = arith.constant dense<0.000000e+00> : vector<16x16xf32>
    %70 = tpu.matmul %65, %19, %cst_50 {dimension_numbers = #tpu.dot_dimension_numbers<[1], [0], [0], [1], [0, 0, 1, 1], [], []>, precision = #tpu.contract_precision<fp32>} : vector<16x16xf32>, vector<16x16xf32>, vector<16x16xf32> -> vector<16x16xf32>
    %71 = arith.addf %69, %70 : vector<16x16xf32>
    %c0_51 = arith.constant 0 : index
    %c0_52 = arith.constant 0 : index
    %c0_53 = arith.constant 0 : index
    %c0_54 = arith.constant 0 : index
    %72 = vector.load %arg8[%c0_51, %c0_52, %c0_53, %c0_54] : memref<1x2x16x16xf32, #tpu.memory_space<vmem>>, vector<1x1x16x16xf32>
    %73 = vector.shape_cast %72 : vector<1x1x16x16xf32> to vector<16x16xf32>
    %74 = vector.shape_cast %68 : vector<16x16xf32> to vector<1x1x16x16xf32>
    tpu.vector_store %arg8[%c0_51, %c0_52, %c0_53, %c0_54], %74 {strides = array<i32>} : memref<1x2x16x16xf32, #tpu.memory_space<vmem>>, vector<1x1x16x16xf32>,
    %c0_55 = arith.constant 0 : index
    %c1_56 = arith.constant 1 : index
    %c0_57 = arith.constant 0 : index
    %c0_58 = arith.constant 0 : index
    %75 = vector.load %arg8[%c0_55, %c1_56, %c0_57, %c0_58] : memref<1x2x16x16xf32, #tpu.memory_space<vmem>>, vector<1x1x16x16xf32>
    %76 = vector.shape_cast %75 : vector<1x1x16x16xf32> to vector<16x16xf32>
    %77 = vector.shape_cast %71 : vector<16x16xf32> to vector<1x1x16x16xf32>
    tpu.vector_store %arg8[%c0_55, %c1_56, %c0_57, %c0_58], %77 {strides = array<i32>} : memref<1x2x16x16xf32, #tpu.memory_space<vmem>>, vector<1x1x16x16xf32>,
    return
  }
  func.func @transform_0(%arg0: i32) -> (i32, i32, i32, i32) {
    %c0_i32 = arith.constant 0 : i32
    %c0_i32_0 = arith.constant 0 : i32
    %c0_i32_1 = arith.constant 0 : i32
    %c0_i32_2 = arith.constant 0 : i32
    return %arg0, %c0_i32, %c0_i32_0, %c0_i32_1 : i32, i32, i32, i32
  }
  func.func @transform_1(%arg0: i32) -> (i32, i32, i32, i32) {
    %c0_i32 = arith.constant 0 : i32
    %c0_i32_0 = arith.constant 0 : i32
    %c0_i32_1 = arith.constant 0 : i32
    %c0_i32_2 = arith.constant 0 : i32
    return %arg0, %c0_i32, %c0_i32_0, %c0_i32_1 : i32, i32, i32, i32
  }
  func.func @transform_2(%arg0: i32) -> (i32, i32, i32, i32) {
    %c0_i32 = arith.constant 0 : i32
    %c0_i32_0 = arith.constant 0 : i32
    %c0_i32_1 = arith.constant 0 : i32
    %c0_i32_2 = arith.constant 0 : i32
    return %arg0, %c0_i32, %c0_i32_0, %c0_i32_1 : i32, i32, i32, i32
  }
  func.func @transform_3(%arg0: i32) -> (i32, i32, i32) {
    %c0_i32 = arith.constant 0 : i32
    %c0_i32_0 = arith.constant 0 : i32
    %c0_i32_1 = arith.constant 0 : i32
    %c0_i32_2 = arith.constant 0 : i32
    return %c0_i32, %c0_i32_0, %c0_i32_1 : i32, i32, i32
  }
  func.func @transform_4(%arg0: i32) -> (i32, i32, i32) {
    %c0_i32 = arith.constant 0 : i32
    %c0_i32_0 = arith.constant 0 : i32
    %c0_i32_1 = arith.constant 0 : i32
    %c0_i32_2 = arith.constant 0 : i32
    return %c0_i32, %c0_i32_0, %c0_i32_1 : i32, i32, i32
  }
  func.func @transform_5(%arg0: i32) -> (i32, i32, i32) {
    %c0_i32 = arith.constant 0 : i32
    %c0_i32_0 = arith.constant 0 : i32
    %c0_i32_1 = arith.constant 0 : i32
    %c0_i32_2 = arith.constant 0 : i32
    return %c0_i32, %c0_i32_0, %c0_i32_1 : i32, i32, i32
  }
  func.func @transform_6(%arg0: i32) -> (i32, i32, i32) {
    %c0_i32 = arith.constant 0 : i32
    %c0_i32_0 = arith.constant 0 : i32
    %c0_i32_1 = arith.constant 0 : i32
    %c0_i32_2 = arith.constant 0 : i32
    return %c0_i32, %c0_i32_0, %c0_i32_1 : i32, i32, i32
  }
  func.func @transform_7(%arg0: i32) -> (i32, i32, i32, i32) {
    %c0_i32 = arith.constant 0 : i32
    %c0_i32_0 = arith.constant 0 : i32
    %c0_i32_1 = arith.constant 0 : i32
    %c0_i32_2 = arith.constant 0 : i32
    return %arg0, %c0_i32, %c0_i32_0, %c0_i32_1 : i32, i32, i32, i32
  }
}

</mosaic_0001>

<bundles_post_ra>
// kernel: data_consistency_kspace.1
= control target key start
LH: loop header
LB: loop body
LE: loop exit
PB: predicated region body
PF: predicated region fallthrough
CT: control target
= control target key end

     0   :  { %12 = vsyncpa [#allocation3], 0  ;;  %s10995_s0 = inlined_call_operand.vmem [shape: f32[2,2,16,16], index: 0, kind: input, shape index: {}]   ;;  %s10996_s1 = inlined_call_operand.vmem [shape: f32[2,2,16,16], index: 1, kind: input, shape index: {}]   ;;  %s10997_s2 = inlined_call_operand.vmem [shape: f32[2,2,16,16], index: 2, kind: input, shape index: {}]   ;;  %s10998_s3 = inlined_call_operand.vmem [shape: f32[2,16,16], index: 3, kind: input, shape index: {}, may-alias: {3,4}]   ;;  %s10999_s4 = inlined_call_operand.vmem [shape: f32[2,16,16], index: 4, kind: input, shape index: {}, may-alias: {3,4}]   ;;  %s11000_s5 = inlined_call_operand.vmem [shape: f32[2,16,16], index: 5, kind: input, shape index: {}, may-alias: {5,6}]   ;;  %s11001_s6 = inlined_call_operand.vmem [shape: f32[2,16,16], index: 6, kind: input, shape index: {}, may-alias: {5,6}]   ;;  %s11002_s7 = inlined_call_operand.hbm [shape: f32[2,2,16,16], index: 7, kind: output, shape index: {}]  }
   0x1   :  { %14 = vsyncpa [#allocation3 + $0x1], 0  ;;  %s10345_s24 = smov 0   ;;  %s10347_s25 = smov 0  }
   0x2   :  { %s10349_s26 = smov 0   ;;  %s10351_s27 = smov 0  }
   0x3 LB: > { %s10366_s28 = sadd.s32 4294967295, %s10300_s27   ;;  %s8559_s29 = sadd.s32 4294967294, %s10300_s27   ;;  %s10300_s27 = sphi %s10351_s27, %s11008_s27   ;;  %s10296_s26 = sphi %s10349_s26, %s11007_s26   ;;  %s10292_s25 = sphi %s10347_s25, %s11006_s25   ;;  %s10288_s24 = sphi %s10345_s24, %s11005_s24  }
   0x4   : > { %s10370_s30 = sadd.s32 1, %s10300_s27   ;;  %s189_s8 = sadd.s32 1, %s10296_s26 }
   0x5   : > { %s186_s9 = ssub.s32 %s10300_s27, %s10370_s30  ;;  %p199_p0 = scmp.ne.s32.totalorder %s10296_s26, %s10292_s25 }
   0x6   : > { %p187_p1 = scmp.eq.s32.totalorder %s186_s9, 0  ;;  %p200_p2 = scmp.eq.s32.totalorder %s10366_s28, 1 }
   0x7   : > { %p205_p3 = scmp.ne.s32.totalorder %s10292_s25, %s10288_s24  ;;  %p206_p4 = scmp.eq.s32.totalorder %s8559_s29, 1 }
   0x8   : > { %s10381_s10 = scalar_select %p187_p1, %s10296_s26, %s189_s8  }
   0x9   : > { %p10383_p5 = por %p200_p2, %p199_p0  ;;  %p10387_p6 = por %p206_p4, %p205_p3 }
   0xa   : > { %p8562_p7 = scmp.ge.s32.totalorder %s10300_s27, 1  ;;  %p260_p8 = scmp.lt.s32.totalorder %s10300_s27, 3 }
   0xc   : > { %p261_p9 = pnand %p8562_p7, %p260_p8 }
   0xd   : > { %p302_p10 = scmp.lt.s32.totalorder (!%p261_p9), %s10366_s28, 1  ;;  %v329_v0 = vld [vmem:[%s10998_s3] sm:$0xff] (!%p261_p9)  ;;  %vm349_vm0 = vcmask (!%p261_p9), 130048   ;;  %v8570_v1 = vld [vmem:[%s10998_s3 + $0x10] sm:$0xff] (!%p261_p9)  ;;  %v330_v2 = vld [vmem:[%s10998_s3 + $0x8] sm:$0xff] (!%p261_p9)  ;;  %s299_s15 = sand.u32 (!%p261_p9), 1, %s10292_s25  }
   0xe   : > { %264 = sbr.rel (%p261_p9) target bundleno = 1285 (0x505), region = 48  ;;  %v351_v3 = vsel (!%p261_p9), %vm349_vm0, %v329_v0, 0  ;;  %v859_v4 = vsel (!%p261_p9), %vm349_vm0, %v8570_v1, 0  ;;  %v354_v5 = vsel (!%p261_p9), %vm349_vm0, %v330_v2, 0  ;;  %v8571_v6 = vld [vmem:[%s10998_s3 + $0x18] sm:$0xff] (!%p261_p9)  ;;  %v334_v60 = vld [vmem:[%s10999_s4] sm:$0xff] (!%p261_p9) }
   0xf   : > { %v10410_v7 = vand.u32 (!%p261_p9), 4294901760, %v351_v3  ;;  %v10412_v8 = vand.u32 (!%p261_p9), 4294901760, %v859_v4  ;;  %v10414_v9 = vand.u32 (!%p261_p9), 4294901760, %v354_v5  ;;  %v862_v10 = vsel (!%p261_p9), %vm349_vm0, %v8571_v6, 0  ;;  %v335_v61 = vld [vmem:[%s10999_s4 + $0x8] sm:$0xff] (!%p261_p9)  ;;  %s8563_s16 = sshll.u32 (!%p261_p9), %s299_s15, 5 }
  0x10   : > { %v10417_v11 = vand.u32 (!%p261_p9), 4294901760, %v862_v10  ;;  %v2379_v62 = vand.u32 (!%p261_p9), 4294901760, %v334_v60  ;;  %v2382_v63 = vand.u32 (!%p261_p9), 4294901760, %v335_v61  ;;  %s8588_s19 = sshll.u32 (!%p261_p9), %s10366_s28, 9  ;;  %s10954_s23 = scalar_lea.sflag (!%p261_p9), [#allocation3], %s299_s15 }
  0x11   : > { %v10422_v12 = vsub.f32 (!%p261_p9), %v351_v3, %v10410_v7  ;;  %v10425_v13 = vsub.f32 (!%p261_p9), %v859_v4, %v10412_v8  ;;  %v10428_v14 = vsub.f32 (!%p261_p9), %v354_v5, %v10414_v9  ;;  %s10302_s29 = smov (!%p261_p9), [#allocation2]  }
  0x12   : > { %v10437_v15 = vsub.f32 (!%p261_p9), %v862_v10, %v10417_v11  ;;  %v10539_v0 = vpack.c.bf16 (!%p261_p9), %v2382_v63, %v2379_v62  ;;  %v2467_v1 = vsub.f32 (!%p261_p9), %v334_v60, %v2379_v62  ;;  %v2474_v2 = vsub.f32 (!%p261_p9), %v335_v61, %v2382_v63  ;;  %v339_v60 = vld [vmem:[%s11000_s5] sm:$0xff] (!%p261_p9)  ;;  %v8574_v61 = vld [vmem:[%s11000_s5 + $0x10] sm:$0xff] (!%p261_p9) }
  0x13   : > { %v10442_v18 = vand.u32 (!%p261_p9), 4294901760, %v10422_v12  ;;  %v10445_v19 = vand.u32 (!%p261_p9), 4294901760, %v10425_v13  ;;  %v10448_v20 = vand.u32 (!%p261_p9), 4294901760, %v10428_v14  ;;  %v4411_v62 = vsel (!%p261_p9), %vm349_vm0, %v339_v60, 0 }
  0x14   : > { %v10451_v23 = vand.u32 (!%p261_p9), 4294901760, %v10437_v15  ;;  %v2468_v3 = vand.u32 (!%p261_p9), 4294901760, %v2467_v1  ;;  %v2475_v4 = vand.u32 (!%p261_p9), 4294901760, %v2474_v2  ;;  %v9749_v10 = vpack.c.bf16 (!%p261_p9), %v2474_v2, %v2467_v1 }
  0x15   : > { %s303_s21 = scalar_select %p302_p10, %s10366_s28, 1  ;;  %v426_v24 = vsub.f32 %v10422_v12, %v10442_v18  ;;  %v934_v25 = vsub.f32 %v10425_v13, %v10445_v19  ;;  %v436_v26 = vsub.f32 %v10428_v14, %v10448_v20  ;;  %v4919_v63 = vsel %vm349_vm0, %v8574_v61, 0 }
  0x16   : > { %v944_v28 = vsub.f32 %v10437_v15, %v10451_v23  ;;  %v2469_v5 = vsub.f32 %v2467_v1, %v2468_v3  ;;  %v2476_v6 = vsub.f32 %v2474_v2, %v2475_v4  ;;  %v10667_v1 = vand.u32 4294901760, %v4919_v63 }
  0x17   : > { %s10419_s22 = sshll.u32 %s303_s21, 5  ;;  %v10463_v31 = vand.u32 4294901760, %v426_v24  ;;  %v10465_v32 = vand.u32 4294901760, %v934_v25  ;;  %v10469_v33 = vand.u32 4294901760, %v436_v26  ;;  %s10950_s21 = scalar_lea.hbm %s11002_s7, %s8588_s19 }
  0x18   : > { %s10434_s8 = scalar_lea.vmem %s10995_s0, %s10419_s22  ;;  %v10471_v34 = vand.u32 4294901760, %v944_v28  ;;  %s316_s17 = scalar_lea.vmem %s10997_s2, %s10419_s22 }
  0x19   : > { %v317_v16 = vld [vmem:[%s10434_s8] sm:$0xff]  ;;  %v318_v17 = vld [vmem:[%s10434_s8 + $0x8] sm:$0xff]  ;;  %8977 = vmatprep.mubr.f32.mxu1 %v10463_v31  ;;  %9061 = vmatprep.mubr.f32.mxu0 %v10465_v32  ;;  %v319_v44 = vld [vmem:[%s10434_s8 + $0x10] sm:$0xff]  ;;  %s311_s20 = scalar_lea.vmem %s10996_s1, %s10419_s22 }
  0x1a   : > { %v357_v21 = vand.u32 4294901760, %v317_v16  ;;  %v360_v22 = vand.u32 4294901760, %v318_v17  ;;  %v320_v45 = vld [vmem:[%s10434_s8 + $0x18] sm:$0xff]  ;;  %v865_v46 = vand.u32 4294901760, %v319_v44  ;;  %s10242_s8 = sshll.u32 %s10302_s29, 4  ;;  %s10243_s8 = int_to_ptr.vmem [resolvable:$false] %s10242_s8 }
  0x1b   : > { %v868_v47 = vand.u32 4294901760, %v320_v45  ;;  %s10244_s9 = scalar_lea.vmem %s10243_s8, 1024 }
  0x1c   : > { %v10459_v27 = vpack.c.bf16 %v360_v22, %v357_v21  ;;  %v445_v29 = vsub.f32 %v317_v16, %v357_v21  ;;  %v452_v30 = vsub.f32 %v318_v17, %v360_v22  ;;  %v953_v48 = vsub.f32 %v319_v44, %v865_v46  ;;  %v8572_v44 = vld [vmem:[%s10999_s4 + $0x10] sm:$0xff] }
  0x1d   : > { %v960_v49 = vsub.f32 %v320_v45, %v868_v47  ;;  %v9669_v52 = vpack.c.bf16 %v868_v47, %v865_v46  ;;  %v8573_v45 = vld [vmem:[%s10999_s4 + $0x18] sm:$0xff]  ;;  %v2887_v46 = vand.u32 4294901760, %v8572_v44 }
  0x1e   : > { %9646 = vmatprep.subr.bf16.mxu1 %v10459_v27  ;;  %9694 = vmatprep.subr.bf16.mxu0 %v10459_v27  ;;  %v446_v35 = vand.u32 4294901760, %v445_v29  ;;  %v453_v36 = vand.u32 4294901760, %v452_v30  ;;  %v9653_v42 = vpack.c.bf16 %v452_v30, %v445_v29  ;;  %v954_v50 = vand.u32 4294901760, %v953_v48 }
  0x1f   : > { %9648 = vmatpush3.bf16.msra.mxu1 %v10459_v27  ;;  %9696 = vmatpush3.bf16.msra.mxu0 %v10459_v27  ;;  %v961_v51 = vand.u32 4294901760, %v960_v49  ;;  %v9677_v58 = vpack.c.bf16 %v960_v49, %v953_v48  ;;  %v2890_v47 = vand.u32 4294901760, %v8573_v45 }
  0x20   : > { %v447_v37 = vsub.f32 %v445_v29, %v446_v35  ;;  %v454_v38 = vsub.f32 %v452_v30, %v453_v36  ;;  %v9661_v43 = vpack.c.bf16 %v453_v36, %v446_v35  ;;  %v955_v53 = vsub.f32 %v953_v48, %v954_v50 }
  0x21   : > { %v962_v54 = vsub.f32 %v960_v49, %v961_v51  ;;  %v9685_v59 = vpack.c.bf16 %v961_v51, %v954_v50  ;;  %v2975_v48 = vsub.f32 %v8572_v44, %v2887_v46  ;;  %v2982_v49 = vsub.f32 %v8573_v45, %v2890_v47 }
  0x22   : > { %8978 = vmatmul.mubr.f32.vlgmr.msra.gmra.mrb[0].mxu1 %v10469_v33  ;;  %9062 = vmatmul.mubr.f32.vlgmr.msra.gmra.mrb[0].mxu0 %v10471_v34  ;;  %v448_v39 = vand.u32 4294901760, %v447_v37  ;;  %v455_v40 = vand.u32 4294901760, %v454_v38  ;;  %v956_v55 = vand.u32 4294901760, %v955_v53 }
  0x23   : > { %8984 = vmatprep.mubr.f32.mxu1 %v10410_v7  ;;  %9068 = vmatprep.mubr.f32.mxu0 %v10412_v8  ;;  %v963_v56 = vand.u32 4294901760, %v962_v54  ;;  %v2976_v50 = vand.u32 4294901760, %v2975_v48  ;;  %v2983_v51 = vand.u32 4294901760, %v2982_v49 }
  0x24   : > { %v9649_v41 = vpack.c.bf16 %v455_v40, %v448_v39 }
  0x25   : > { %v9673_v57 = vpack.c.bf16 %v963_v56, %v956_v55  ;;  %v2977_v53 = vsub.f32 %v2975_v48, %v2976_v50  ;;  %v2984_v54 = vsub.f32 %v2982_v49, %v2983_v51 }
  0x26   : > { %9650 = vmatprep.subr.bf16.mxu1 %v9649_v41  ;;  %9698 = vmatprep.subr.bf16.mxu0 %v9649_v41 }
  0x27   : > { %9652 = vmatpush3.bf16.msra.mxu1 %v9649_v41  ;;  %9700 = vmatpush3.bf16.msra.mxu0 %v9649_v41  ;;  %v2978_v55 = vand.u32 4294901760, %v2977_v53  ;;  %v2985_v56 = vand.u32 4294901760, %v2984_v54 }
  0x28   : > { %9654 = vmatprep.subr.bf16.mxu1 %v9653_v42  ;;  %9702 = vmatprep.subr.bf16.mxu0 %v9653_v42 }
  0x2a   : > { %8985 = vmatmul.mubr.f32.vlgmr.msra.gmra.mrb[0].mxu1 %v10414_v9  ;;  %9069 = vmatmul.mubr.f32.vlgmr.msra.gmra.mrb[0].mxu0 %v10417_v11 }
  0x2b   : > { %9656 = vmatpush3.bf16.msra.mxu1 %v9653_v42  ;;  %9704 = vmatpush3.bf16.msra.mxu0 %v9653_v42 }
  0x2c   : > { %8991 = vmatprep.mubr.f32.mxu1 %v10422_v12  ;;  %9075 = vmatprep.mubr.f32.mxu0 %v10425_v13 }
  0x2d   : > { %9658 = vmatprep.subr.bf16.mxu1 %v10459_v27  ;;  %9706 = vmatprep.subr.bf16.mxu0 %v10459_v27 }
  0x32   : > { %8992 = vmatmul.mubr.f32.vlgmr.msra.gmra.mrb[0].mxu1 %v10428_v14  ;;  %9076 = vmatmul.mubr.f32.vlgmr.msra.gmra.mrb[0].mxu0 %v10437_v15 }
  0x33   : > { %9660 = vmatpush3.bf16.msra.mxu1 %v10459_v27  ;;  %9708 = vmatpush3.bf16.msra.mxu0 %v10459_v27 }
  0x34   : > { %8998 = vmatprep.mubr.f32.mxu1 %v10442_v18  ;;  %9082 = vmatprep.mubr.f32.mxu0 %v10445_v19 }
  0x35   : > { %9662 = vmatprep.subr.bf16.mxu1 %v9661_v43  ;;  %9710 = vmatprep.subr.bf16.mxu0 %v9661_v43 }
  0x3a   : > { %8999 = vmatmul.mubr.f32.vlgmr.msra.gmra.mrb[0].mxu1 %v10448_v20  ;;  %9083 = vmatmul.mubr.f32.vlgmr.msra.gmra.mrb[0].mxu0 %v10451_v23 }
  0x3b   : > { %9664 = vmatpush3.bf16.msra.mxu1 %v9661_v43  ;;  %9712 = vmatpush3.bf16.msra.mxu0 %v9661_v43 }
  0x3c   : > { %9005 = vmatprep.mubr.f32.mxu1 %v10410_v7  ;;  %9089 = vmatprep.mubr.f32.mxu0 %v10412_v8 }
  0x3d   : > { %9666 = vmatprep.subr.bf16.mxu1 %v10459_v27  ;;  %9714 = vmatprep.subr.bf16.mxu0 %v10459_v27 }
  0x42   : > { %9006 = vmatmul.mubr.f32.vlgmr.msra.gmra.mrb[0].mxu1 %v10414_v9  ;;  %9090 = vmatmul.mubr.f32.vlgmr.msra.gmra.mrb[0].mxu0 %v10417_v11 }
  0x43   : > { %9668 = vmatpush3.bf16.msra.mxu1 %v10459_v27  ;;  %9716 = vmatpush3.bf16.msra.mxu0 %v10459_v27 }
  0x44   : > { %9012 = vmatprep.mubr.f32.mxu1 %v10410_v7  ;;  %9096 = vmatprep.mubr.f32.mxu0 %v10412_v8 }
  0x45   : > { %9670 = vmatprep.subr.bf16.mxu1 %v9669_v52  ;;  %9718 = vmatprep.subr.bf16.mxu0 %v9669_v52 }
  0x4a   : > { %9013 = vmatmul.mubr.f32.vlgmr.msra.gmra.mrb[0].mxu1 %v10414_v9  ;;  %9097 = vmatmul.mubr.f32.vlgmr.msra.gmra.mrb[0].mxu0 %v10417_v11 }
  0x4b   : > { %9672 = vmatpush3.bf16.msra.mxu1 %v9669_v52  ;;  %9019 = vmatprep.mubr.f32.mxu1 %v10465_v32 }
  0x4c   : > { %9720 = vmatpush3.bf16.msra.mxu0 %v9669_v52  ;;  %9103 = vmatprep.mubr.f32.mxu0 %v10463_v31 }
  0x4d   : > { %9674 = vmatprep.subr.bf16.mxu1 %v9673_v57  ;;  %9722 = vmatprep.subr.bf16.mxu0 %v9673_v57 }
  0x4e   : > { %9020 = vmatmul.mubr.f32.vlgmr.msra.gmra.mrb[2].mxu1 %v10471_v34 }
  0x4f   : > { %9676 = vmatpush3.bf16.msra.mxu1 %v9673_v57  ;;  %9026 = vmatprep.mubr.f32.mxu1 %v10412_v8 }
  0x50   : > { %9678 = vmatprep.subr.bf16.mxu1 %v9677_v58 }
  0x52   : > { %9104 = vmatmul.mubr.f32.vlgmr.msra.gmra.mrb[0].mxu0 %v10469_v33 }
  0x53   : > { %9724 = vmatpush3.bf16.msra.mxu0 %v9673_v57  ;;  %9110 = vmatprep.mubr.f32.mxu0 %v10410_v7  ;;  %v9769_v57 = vpack.c.bf16 %v2985_v56, %v2978_v55 }
  0x54   : > { %9726 = vmatprep.subr.bf16.mxu0 %v9677_v58 }
  0x56   : > { %9027 = vmatmul.mubr.f32.vlgmr.msra.gmra.mrb[2].mxu1 %v10417_v11 }
  0x57   : > { %9680 = vmatpush3.bf16.msra.mxu1 %v9677_v58  ;;  %9033 = vmatprep.mubr.f32.mxu1 %v10425_v13 }
  0x58   : > { %9682 = vmatprep.subr.bf16.mxu1 %v9669_v52 }
  0x5a   : > { %9111 = vmatmul.mubr.f32.vlgmr.msra.gmra.mrb[0].mxu0 %v10414_v9 }
  0x5b   : > { %9728 = vmatpush3.bf16.msra.mxu0 %v9677_v58  ;;  %9117 = vmatprep.mubr.f32.mxu0 %v10422_v12  ;;  %v9773_v58 = vpack.c.bf16 %v2982_v49, %v2975_v48 }
  0x5c   : > { %9730 = vmatprep.subr.bf16.mxu0 %v9669_v52 }
  0x5e   : > { %9034 = vmatmul.mubr.f32.vlgmr.msra.gmra.mrb[2].mxu1 %v10437_v15 }
  0x5f   : > { %9684 = vmatpush3.bf16.msra.mxu1 %v9669_v52  ;;  %9040 = vmatprep.mubr.f32.mxu1 %v10445_v19 }
  0x60   : > { %9686 = vmatprep.subr.bf16.mxu1 %v9685_v59 }
  0x62   : > { %9118 = vmatmul.mubr.f32.vlgmr.msra.gmra.mrb[0].mxu0 %v10428_v14 }
  0x63   : > { %9732 = vmatpush3.bf16.msra.mxu0 %v9669_v52  ;;  %9124 = vmatprep.mubr.f32.mxu0 %v10442_v18 }
  0x64   : > { %9734 = vmatprep.subr.bf16.mxu0 %v9685_v59 }
  0x66   : > { %9041 = vmatmul.mubr.f32.vlgmr.msra.gmra.mrb[2].mxu1 %v10451_v23 }
  0x67   : > { %9688 = vmatpush3.bf16.msra.mxu1 %v9685_v59  ;;  %9047 = vmatprep.mubr.f32.mxu1 %v10412_v8 }
  0x68   : > { %9690 = vmatprep.subr.bf16.mxu1 %v9669_v52 }
  0x6a   : > { %9125 = vmatmul.mubr.f32.vlgmr.msra.gmra.mrb[0].mxu0 %v10448_v20 }
  0x6b   : > { %9736 = vmatpush3.bf16.msra.mxu0 %v9685_v59  ;;  %9131 = vmatprep.mubr.f32.mxu0 %v10410_v7  ;;  %v9781_v59 = vpack.c.bf16 %v2983_v51, %v2976_v50 }
  0x6c   : > { %9738 = vmatprep.subr.bf16.mxu0 %v9669_v52 }
  0x6e   : > { %9048 = vmatmul.mubr.f32.vlgmr.msra.gmra.mrb[2].mxu1 %v10417_v11 }
  0x6f   : > { %9692 = vmatpush3.bf16.msra.mxu1 %v9669_v52  ;;  %9054 = vmatprep.mubr.f32.mxu1 %v10412_v8  ;;  %v2477_v8 = vand.u32 4294901760, %v2476_v6 }
  0x70   : > { %9742 = vmatprep.subr.bf16.mxu1 %v10539_v0 }
  0x72   : > { %9132 = vmatmul.mubr.f32.vlgmr.msra.gmra.mrb[0].mxu0 %v10414_v9 }
  0x73   : > { %9740 = vmatpush3.bf16.msra.mxu0 %v9669_v52  ;;  %9138 = vmatprep.mubr.f32.mxu0 %v10410_v7  ;;  %v2470_v7 = vand.u32 4294901760, %v2469_v5  ;;  %v9765_v52 = vpack.c.bf16 %v2890_v47, %v2887_v46 }
  0x74   : > { %9790 = vmatprep.subr.bf16.mxu0 %v10539_v0 }
  0x76   : > { %9055 = vmatmul.mubr.f32.vlgmr.msra.gmra.mrb[2].mxu1 %v10417_v11  ;;  %v10545_v11 = vpack.c.bf16 %v2475_v4, %v2468_v3  ;;  %v10673_v3 = vsub.f32 %v4919_v63, %v10667_v1 }
  0x77   : > { %9744 = vmatpush3.bf16.msra.mxu1 %v10539_v0 }
  0x78   : > { %v10679_v5 = vand.u32 4294901760, %v10673_v3 }
  0x7a   : > { %9139 = vmatmul.mubr.f32.vlgmr.msra.gmra.mrb[0].mxu0 %v10414_v9  ;;  %v9745_v9 = vpack.c.bf16 %v2477_v8, %v2470_v7  ;;  %v4994_v7 = vsub.f32 %v10673_v3, %v10679_v5 }
  0x7b   : > { %9792 = vmatpush3.bf16.msra.mxu0 %v10539_v0 }
  0x7c   : > { %9746 = vmatprep.subr.bf16.mxu1 %v9745_v9  ;;  %9794 = vmatprep.subr.bf16.mxu0 %v9745_v9 }
 0x11d   : > { %v9014_v12 = vpop.f32.mrb[0].mxu1 }
 0x11e   : > { %v848_v13 = vpop.f32.mrb[1].mxu1 }
 0x149   : > { %v9056_v14 = vpop.f32.mrb[2].mxu1 }
 0x14a   : > { %v1367_v15 = vsub.f32 %v9014_v12, %v9056_v14  ;;  %v1356_v16 = vpop.f32.mrb[3].mxu1  ;;  %v340_v12 = vld [vmem:[%s11000_s5 + $0x8] sm:$0xff] }
 0x14b   : > { %v1366_v17 = vsub.f32 %v848_v13, %v1356_v16  ;;  %v8575_v13 = vld [vmem:[%s11000_s5 + $0x18] sm:$0xff]  ;;  %v4414_v14 = vsel %vm349_vm0, %v340_v12, 0 }
 0x14c   : > { %v2376_v18 = vsel %vm349_vm0, %v1367_v15, 0  ;;  %v4922_v15 = vsel %vm349_vm0, %v8575_v13, 0  ;;  %v10707_v16 = vand.u32 4294901760, %v4414_v14 }
 0x14d   : > { %v10548_v19 = vand.u32 4294901760, %v2376_v18  ;;  %v2373_v20 = vsel %vm349_vm0, %v1366_v17, 0  ;;  %v9140_v21 = vpop.f32.mrb[0].mxu0  ;;  %v326_v17 = vld [vmem:[%s316_s17 + $0x8] sm:$0xff] }
 0x14e   : > { %v10551_v22 = vand.u32 4294901760, %v2373_v20  ;;  %v2884_v23 = vsel %vm349_vm0, %v9140_v21, 0  ;;  %v2362_v24 = vpop.f32.mrb[1].mxu0  ;;  %v4395_v21 = vsub.f32 1.0, %v326_v17 }
 0x14f   : > { %v10555_v25 = vsub.f32 %v2376_v18, %v10548_v19  ;;  %v10557_v26 = vand.u32 4294901760, %v2884_v23  ;;  %v2881_v27 = vsel %vm349_vm0, %v2362_v24, 0  ;;  %v10709_v18 = vand.u32 4294901760, %v4922_v15 }
 0x150   : > { %v10561_v28 = vsub.f32 %v2373_v20, %v10551_v22  ;;  %v10563_v29 = vand.u32 4294901760, %v2881_v27  ;;  %v322_v20 = vld [vmem:[%s311_s20 + $0x8] sm:$0xff] }
 0x151   : > { %v10566_v30 = vand.u32 4294901760, %v10555_v25  ;;  %v10569_v31 = vsub.f32 %v2884_v23, %v10557_v26  ;;  %v10712_v23 = vsub.f32 %v4414_v14, %v10707_v16 }
 0x152   : > { %v10572_v32 = vsub.f32 %v2881_v27, %v10563_v29  ;;  %v10575_v33 = vand.u32 4294901760, %v10561_v28  ;;  %v10715_v27 = vsub.f32 %v4922_v15, %v10709_v18 }
 0x153   : > { %v10578_v34 = vand.u32 4294901760, %v10569_v31  ;;  %v2458_v35 = vsub.f32 %v10555_v25, %v10566_v30 }
 0x154   : > { %v2448_v36 = vsub.f32 %v10561_v28, %v10575_v33  ;;  %v10585_v37 = vand.u32 4294901760, %v10572_v32 }
 0x155   : > { %v2966_v38 = vsub.f32 %v10569_v31, %v10578_v34  ;;  %v10593_v41 = vand.u32 4294901760, %v2458_v35 }
 0x156   : > { %v10589_v39 = vand.u32 4294901760, %v2448_v36  ;;  %v2956_v40 = vsub.f32 %v10572_v32, %v10585_v37 }
 0x157   : > { %v2967_v43 = vand.u32 4294901760, %v2966_v38  ;;  %v10718_v38 = vand.u32 4294901760, %v10712_v23 }
 0x158   : > { %9145 = vmatprep.mubr.f32.mxu1 %v10589_v39  ;;  %v2957_v42 = vand.u32 4294901760, %v2956_v40 }
 0x159   : > { %9146 = vmatmul.mubr.f32.vlgmr.msra.gmra.mrb[4].mxu1 %v10593_v41  ;;  %v4496_v50 = vsub.f32 %v10712_v23, %v10718_v38 }
 0x15a   : > { %9152 = vmatprep.mubr.f32.mxu1 %v10551_v22  ;;  %9229 = vmatprep.mubr.f32.mxu0 %v2957_v42 }
 0x15b   : > { %9230 = vmatmul.mubr.f32.vlgmr.msra.gmra.mrb[2].mxu0 %v2967_v43  ;;  %9748 = vmatpush3.bf16.msra.mxu1 %v9745_v9  ;;  %v10729_v61 = vand.u32 4294901760, %v4496_v50 }
 0x15c   : > { %9236 = vmatprep.mubr.f32.mxu0 %v10563_v29  ;;  %9796 = vmatpush3.bf16.msra.mxu0 %v9745_v9  ;;  %v10687_v9 = vand.u32 4294901760, %v4994_v7 }
 0x15d   : > { %9750 = vmatprep.subr.bf16.mxu1 %v9749_v10  ;;  %9798 = vmatprep.subr.bf16.mxu0 %v9749_v10 }
 0x161   : > { %9153 = vmatmul.mubr.f32.vlgmr.msra.gmra.mrb[4].mxu1 %v10548_v19 }
 0x162   : > { %9159 = vmatprep.mubr.f32.mxu1 %v10561_v28  ;;  %9752 = vmatpush3.bf16.msra.mxu1 %v9749_v10 }
 0x163   : > { %9237 = vmatmul.mubr.f32.vlgmr.msra.gmra.mrb[2].mxu0 %v10557_v26  ;;  %9754 = vmatprep.subr.bf16.mxu1 %v10539_v0 }
 0x164   : > { %9243 = vmatprep.mubr.f32.mxu0 %v10572_v32  ;;  %9800 = vmatpush3.bf16.msra.mxu0 %v9749_v10 }
 0x165   : > { %9802 = vmatprep.subr.bf16.mxu0 %v10539_v0 }
 0x169   : > { %9160 = vmatmul.mubr.f32.vlgmr.msra.gmra.mrb[4].mxu1 %v10555_v25 }
 0x16a   : > { %9166 = vmatprep.mubr.f32.mxu1 %v10575_v33  ;;  %9756 = vmatpush3.bf16.msra.mxu1 %v10539_v0 }
 0x16b   : > { %9244 = vmatmul.mubr.f32.vlgmr.msra.gmra.mrb[2].mxu0 %v10569_v31  ;;  %9758 = vmatprep.subr.bf16.mxu1 %v10545_v11 }
 0x16c   : > { %9250 = vmatprep.mubr.f32.mxu0 %v10585_v37  ;;  %9804 = vmatpush3.bf16.msra.mxu0 %v10539_v0 }
 0x16d   : > { %9806 = vmatprep.subr.bf16.mxu0 %v10545_v11 }
 0x171   : > { %9167 = vmatmul.mubr.f32.vlgmr.msra.gmra.mrb[4].mxu1 %v10566_v30 }
 0x172   : > { %9173 = vmatprep.mubr.f32.mxu1 %v10551_v22  ;;  %9760 = vmatpush3.bf16.msra.mxu1 %v10545_v11 }
 0x173   : > { %9251 = vmatmul.mubr.f32.vlgmr.msra.gmra.mrb[2].mxu0 %v10578_v34  ;;  %9762 = vmatprep.subr.bf16.mxu1 %v10539_v0 }
 0x174   : > { %9257 = vmatprep.mubr.f32.mxu0 %v10563_v29  ;;  %9808 = vmatpush3.bf16.msra.mxu0 %v10545_v11 }
 0x175   : > { %9810 = vmatprep.subr.bf16.mxu0 %v10539_v0 }
 0x179   : > { %9174 = vmatmul.mubr.f32.vlgmr.msra.gmra.mrb[4].mxu1 %v10548_v19 }
 0x17a   : > { %9180 = vmatprep.mubr.f32.mxu1 %v10551_v22  ;;  %9764 = vmatpush3.bf16.msra.mxu1 %v10539_v0 }
 0x17b   : > { %9258 = vmatmul.mubr.f32.vlgmr.msra.gmra.mrb[2].mxu0 %v10557_v26  ;;  %9766 = vmatprep.subr.bf16.mxu1 %v9765_v52 }
 0x17c   : > { %9264 = vmatprep.mubr.f32.mxu0 %v10563_v29  ;;  %9812 = vmatpush3.bf16.msra.mxu0 %v10539_v0  ;;  %v10665_v0 = vand.u32 4294901760, %v4411_v62 }
 0x17d   : > { %9814 = vmatprep.subr.bf16.mxu0 %v9765_v52 }
 0x17e   : > { %v10670_v2 = vsub.f32 %v4411_v62, %v10665_v0 }
 0x180   : > { %v10676_v4 = vand.u32 4294901760, %v10670_v2 }
 0x181   : > { %9181 = vmatmul.mubr.f32.vlgmr.msra.gmra.mrb[4].mxu1 %v10548_v19 }
 0x182   : > { %9768 = vmatpush3.bf16.msra.mxu1 %v9765_v52  ;;  %9187 = vmatprep.mubr.f32.mxu1 %v2957_v42  ;;  %v4486_v6 = vsub.f32 %v10670_v2, %v10676_v4 }
 0x183   : > { %9265 = vmatmul.mubr.f32.vlgmr.msra.gmra.mrb[2].mxu0 %v10557_v26  ;;  %9770 = vmatprep.subr.bf16.mxu1 %v9769_v57 }
 0x184   : > { %9271 = vmatprep.mubr.f32.mxu0 %v10589_v39  ;;  %9816 = vmatpush3.bf16.msra.mxu0 %v9765_v52  ;;  %v10685_v8 = vand.u32 4294901760, %v4486_v6 }
 0x185   : > { %9188 = vmatmul.mubr.f32.vlgmr.msra.gmra.mrb[6].mxu1 %v2967_v43  ;;  %9818 = vmatprep.subr.bf16.mxu0 %v9769_v57 }
 0x186   : > { %9194 = vmatprep.mubr.f32.mxu1 %v10563_v29  ;;  %9772 = vmatpush3.bf16.msra.mxu1 %v9769_v57 }
 0x187   : > { %9774 = vmatprep.subr.bf16.mxu1 %v9773_v58 }
 0x18b   : > { %9272 = vmatmul.mubr.f32.vlgmr.msra.gmra.mrb[2].mxu0 %v10593_v41  ;;  %v10721_v41 = vand.u32 4294901760, %v10715_v27 }
 0x18c   : > { %9278 = vmatprep.mubr.f32.mxu0 %v10551_v22  ;;  %9820 = vmatpush3.bf16.msra.mxu0 %v9769_v57 }
 0x18d   : > { %9195 = vmatmul.mubr.f32.vlgmr.msra.gmra.mrb[6].mxu1 %v10557_v26  ;;  %9822 = vmatprep.subr.bf16.mxu0 %v9773_v58  ;;  %v5004_v53 = vsub.f32 %v10715_v27, %v10721_v41 }
 0x18e   : > { %9201 = vmatprep.mubr.f32.mxu1 %v10572_v32  ;;  %9776 = vmatpush3.bf16.msra.mxu1 %v9773_v58 }
 0x18f   : > { %9778 = vmatprep.subr.bf16.mxu1 %v9765_v52  ;;  %v10733_v6 = vand.u32 4294901760, %v5004_v53 }
 0x193   : > { %9279 = vmatmul.mubr.f32.vlgmr.msra.gmra.mrb[2].mxu0 %v10548_v19 }
 0x194   : > { %9285 = vmatprep.mubr.f32.mxu0 %v10561_v28  ;;  %9824 = vmatpush3.bf16.msra.mxu0 %v9773_v58 }
 0x195   : > { %9202 = vmatmul.mubr.f32.vlgmr.msra.gmra.mrb[6].mxu1 %v10569_v31  ;;  %9826 = vmatprep.subr.bf16.mxu0 %v9765_v52  ;;  %v327_v31 = vld [vmem:[%s316_s17 + $0x10] sm:$0xff] }
 0x196   : > { %9208 = vmatprep.mubr.f32.mxu1 %v10585_v37  ;;  %9780 = vmatpush3.bf16.msra.mxu1 %v9765_v52  ;;  %v323_v37 = vld [vmem:[%s311_s20 + $0x10] sm:$0xff]  ;;  %v4402_v40 = vsub.f32 1.0, %v327_v31 }
 0x197   : > { %9782 = vmatprep.subr.bf16.mxu1 %v9781_v59  ;;  %v4406_v46 = vmul.f32 %v327_v31, %v323_v37 }
 0x19b   : > { %9286 = vmatmul.mubr.f32.vlgmr.msra.gmra.mrb[2].mxu0 %v10555_v25 }
 0x19c   : > { %9292 = vmatprep.mubr.f32.mxu0 %v10575_v33  ;;  %9828 = vmatpush3.bf16.msra.mxu0 %v9765_v52 }
 0x19d   : > { %9209 = vmatmul.mubr.f32.vlgmr.msra.gmra.mrb[6].mxu1 %v10578_v34  ;;  %9830 = vmatprep.subr.bf16.mxu0 %v9781_v59  ;;  %v324_v34 = vld [vmem:[%s311_s20 + $0x18] sm:$0xff] }
 0x19e   : > { %9215 = vmatprep.mubr.f32.mxu1 %v10563_v29  ;;  %9784 = vmatpush3.bf16.msra.mxu1 %v9781_v59 }
 0x19f   : > { %9786 = vmatprep.subr.bf16.mxu1 %v9765_v52 }
 0x1a3   : > { %9293 = vmatmul.mubr.f32.vlgmr.msra.gmra.mrb[2].mxu0 %v10566_v30 }
 0x1a4   : > { %9299 = vmatprep.mubr.f32.mxu0 %v10551_v22  ;;  %9832 = vmatpush3.bf16.msra.mxu0 %v9781_v59 }
 0x1a5   : > { %9216 = vmatmul.mubr.f32.vlgmr.msra.gmra.mrb[6].mxu1 %v10557_v26  ;;  %9834 = vmatprep.subr.bf16.mxu0 %v9765_v52 }
 0x1a6   : > { %9222 = vmatprep.mubr.f32.mxu1 %v10563_v29  ;;  %9788 = vmatpush3.bf16.msra.mxu1 %v9765_v52  ;;  %v4399_v29 = vmul.f32 %v326_v17, %v322_v20 }
 0x1ab   : > { %9300 = vmatmul.mubr.f32.vlgmr.msra.gmra.mrb[2].mxu0 %v10548_v19 }
 0x1ac   : > { %9306 = vmatprep.mubr.f32.mxu0 %v10551_v22  ;;  %9836 = vmatpush3.bf16.msra.mxu0 %v9765_v52  ;;  %v321_v22 = vld [vmem:[%s311_s20] sm:$0xff] }
 0x1ad   : > { %9223 = vmatmul.mubr.f32.vlgmr.msra.gmra.mrb[6].mxu1 %v10557_v26  ;;  %v328_v26 = vld [vmem:[%s316_s17 + $0x18] sm:$0xff] }
 0x1ae   : > { %9313 = vmatprep.mubr.f32.mxu1 %v10685_v8  ;;  %v4403_v36 = vsub.f32 1.0, %v328_v26  ;;  %v4407_v43 = vmul.f32 %v328_v26, %v324_v34 }
 0x1b3   : > { %9307 = vmatmul.mubr.f32.vlgmr.msra.gmra.mrb[2].mxu0 %v10548_v19  ;;  %v325_v19 = vld [vmem:[%s316_s17] sm:$0xff]  ;;  %s301_s17 = scalar_lea.vmem [#allocation2], %s8563_s16 }
 0x1b4   : > { %9397 = vmatprep.mubr.f32.mxu0 %v10687_v9  ;;  %v4394_v25 = vsub.f32 1.0, %v325_v19  ;;  %v4398_v33 = vmul.f32 %v325_v19, %v321_v22  ;;  %s8473_s18 = sshll.u32 %s301_s17, 4  ;;  %s10945_s18 = int_to_ptr.vmem [resolvable:$true] %s8473_s18 }
 0x1b5   : > { %s10238_s28 = scalar_lea.vmem %s10945_s18, 512  ;;  %p10245_p0 = scmp.lt.s32.totalorder %s10945_s18, %s10243_s8 }
 0x1b6   : > { %p10239_p11 = scmp.ne.s32.totalorder %s10945_s18, %s10238_s28  ;;  %p10246_p1 = scmp.lt.s32.totalorder %s10244_s9, %s10238_s28 }
 0x1b8   : > { %p10240_p12 = pnand %p10239_p11, %p10383_p5  ;;  %p10247_p2 = por %p10246_p1, %p10245_p0 }
 0x1ba   : > { %p10241_p13 = pneg %p10240_p12 }
 0x1bc   : > { %p10248_p3 = pnand %p10247_p2, %p10241_p13 }
 0x254   : > { %v9182_v10 = vpop.f32.mrb[4].mxu1 }
 0x255   : > { %v2870_v11 = vpop.f32.mrb[5].mxu1 }
 0x280   : > { %v9224_v24 = vpop.f32.mrb[6].mxu1 }
 0x281   : > { %v3389_v28 = vsub.f32 %v9182_v10, %v9224_v24  ;;  %v3378_v30 = vpop.f32.mrb[7].mxu1 }
 0x282   : > { %v3388_v32 = vsub.f32 %v2870_v11, %v3378_v30 }
 0x283   : > { %v4397_v35 = vmul.f32 %v4395_v21, %v3389_v28 }
 0x284   : > { %v4396_v39 = vmul.f32 %v4394_v25, %v3388_v32 }
 0x285   : > { %v4401_v42 = vadd.f32 %v4399_v29, %v4397_v35 }
 0x286   : > { %v4400_v44 = vadd.f32 %v4398_v33, %v4396_v39  ;;  %v9308_v45 = vpop.f32.mrb[2].mxu0 }
 0x287   : > { %v4420_v47 = vand.u32 4294901760, %v4401_v42  ;;  %v4405_v48 = vmul.f32 %v9308_v45, %v4403_v36  ;;  %v4384_v49 = vpop.f32.mrb[3].mxu0 }
 0x288   : > { %v4417_v51 = vand.u32 4294901760, %v4400_v44  ;;  %v4404_v52 = vmul.f32 %v4402_v40, %v4384_v49 }
 0x289   : > { %v4512_v54 = vsub.f32 %v4401_v42, %v4420_v47  ;;  %v4409_v55 = vadd.f32 %v4407_v43, %v4405_v48 }
 0x28a   : > { %v10727_v56 = vpack.c.bf16 %v4420_v47, %v4417_v51  ;;  %v4505_v57 = vsub.f32 %v4400_v44, %v4417_v51  ;;  %v4408_v58 = vadd.f32 %v4406_v46, %v4404_v52 }
 0x28b   : > { %v4513_v59 = vand.u32 4294901760, %v4512_v54  ;;  %v4928_v60 = vand.u32 4294901760, %v4409_v55 }
 0x28c   : > { %v4506_v62 = vand.u32 4294901760, %v4505_v57  ;;  %v4925_v63 = vand.u32 4294901760, %v4408_v58  ;;  %9838 = vmatprep.subr.bf16.mxu1 %v10727_v56  ;;  %9886 = vmatprep.subr.bf16.mxu0 %v10727_v56  ;;  %v9845_v7 = vpack.c.bf16 %v4512_v54, %v4505_v57 }
 0x28d   : > { %v5020_v10 = vsub.f32 %v4409_v55, %v4928_v60  ;;  %9840 = vmatpush3.bf16.msra.mxu1 %v10727_v56  ;;  %9888 = vmatpush3.bf16.msra.mxu0 %v10727_v56  ;;  %v4514_v11 = vsub.f32 %v4512_v54, %v4513_v59 }
 0x28e   : > { %v10737_v12 = vpack.c.bf16 %v4928_v60, %v4925_v63  ;;  %v5013_v13 = vsub.f32 %v4408_v58, %v4925_v63  ;;  %v4507_v14 = vsub.f32 %v4505_v57, %v4506_v62  ;;  %v9853_v15 = vpack.c.bf16 %v4513_v59, %v4506_v62 }
 0x28f   : > { %v5021_v17 = vand.u32 4294901760, %v5020_v10  ;;  %v4515_v19 = vand.u32 4294901760, %v4514_v11 }
 0x290   : > { %v5014_v20 = vand.u32 4294901760, %v5013_v13  ;;  %9314 = vmatmul.mubr.f32.vlgmr.msra.gmra.mrb[8].mxu1 %v10729_v61  ;;  %9398 = vmatmul.mubr.f32.vlgmr.msra.gmra.mrb[4].mxu0 %v10733_v6  ;;  %v4508_v21 = vand.u32 4294901760, %v4507_v14  ;;  %v10741_v22 = vpack.c.bf16 %v5020_v10, %v5013_v13 }
 0x291   : > { %v5022_v24 = vsub.f32 %v5020_v10, %v5021_v17  ;;  %9320 = vmatprep.mubr.f32.mxu1 %v10665_v0  ;;  %9404 = vmatprep.mubr.f32.mxu0 %v10667_v1 }
 0x292   : > { %v5015_v25 = vsub.f32 %v5013_v13, %v5014_v20  ;;  %v9841_v26 = vpack.c.bf16 %v4515_v19, %v4508_v21  ;;  %v10745_v28 = vpack.c.bf16 %v5021_v17, %v5014_v20  ;;  %v8577_v13 = vld [vmem:[%s11001_s6 + $0x18] sm:$0xff] }
 0x293   : > { %v5023_v29 = vand.u32 4294901760, %v5022_v24 }
 0x294   : > { %9842 = vmatprep.subr.bf16.mxu1 %v9841_v26  ;;  %9890 = vmatprep.subr.bf16.mxu0 %v9841_v26  ;;  %v5016_v30 = vand.u32 4294901760, %v5015_v25 }
 0x295   : > { %9844 = vmatpush3.bf16.msra.mxu1 %v9841_v26  ;;  %9892 = vmatpush3.bf16.msra.mxu0 %v9841_v26 }
 0x296   : > { %9846 = vmatprep.subr.bf16.mxu1 %v9845_v7  ;;  %9894 = vmatprep.subr.bf16.mxu0 %v9845_v7  ;;  %v9865_v31 = vpack.c.bf16 %v5023_v29, %v5016_v30 }
 0x298   : > { %9321 = vmatmul.mubr.f32.vlgmr.msra.gmra.mrb[8].mxu1 %v10707_v16  ;;  %9405 = vmatmul.mubr.f32.vlgmr.msra.gmra.mrb[4].mxu0 %v10709_v18 }
 0x299   : > { %9848 = vmatpush3.bf16.msra.mxu1 %v9845_v7  ;;  %9896 = vmatpush3.bf16.msra.mxu0 %v9845_v7 }
 0x29a   : > { %9850 = vmatprep.subr.bf16.mxu1 %v10727_v56  ;;  %9898 = vmatprep.subr.bf16.mxu0 %v10727_v56 }
 0x29b   : > { %9327 = vmatprep.mubr.f32.mxu1 %v10670_v2  ;;  %9411 = vmatprep.mubr.f32.mxu0 %v10673_v3 }
 0x2a0   : > { %9328 = vmatmul.mubr.f32.vlgmr.msra.gmra.mrb[8].mxu1 %v10712_v23  ;;  %9412 = vmatmul.mubr.f32.vlgmr.msra.gmra.mrb[4].mxu0 %v10715_v27 }
 0x2a1   : > { %9852 = vmatpush3.bf16.msra.mxu1 %v10727_v56  ;;  %9900 = vmatpush3.bf16.msra.mxu0 %v10727_v56 }
 0x2a2   : > { %9854 = vmatprep.subr.bf16.mxu1 %v9853_v15  ;;  %9902 = vmatprep.subr.bf16.mxu0 %v9853_v15 }
 0x2a3   : > { %9334 = vmatprep.mubr.f32.mxu1 %v10676_v4  ;;  %9418 = vmatprep.mubr.f32.mxu0 %v10679_v5 }
 0x2a8   : > { %9335 = vmatmul.mubr.f32.vlgmr.msra.gmra.mrb[8].mxu1 %v10718_v38  ;;  %9419 = vmatmul.mubr.f32.vlgmr.msra.gmra.mrb[4].mxu0 %v10721_v41 }
 0x2a9   : > { %9856 = vmatpush3.bf16.msra.mxu1 %v9853_v15  ;;  %9904 = vmatpush3.bf16.msra.mxu0 %v9853_v15  ;;  %v6950_v15 = vand.u32 4294901760, %v8577_v13 }
 0x2aa   : > { %9858 = vmatprep.subr.bf16.mxu1 %v10727_v56  ;;  %9906 = vmatprep.subr.bf16.mxu0 %v10727_v56 }
 0x2ab   : > { %9341 = vmatprep.mubr.f32.mxu1 %v10665_v0  ;;  %9425 = vmatprep.mubr.f32.mxu0 %v10667_v1  ;;  %v7042_v19 = vsub.f32 %v8577_v13, %v6950_v15 }
 0x2ad   : > { %v7043_v21 = vand.u32 4294901760, %v7042_v19 }
 0x2af   : > { %v7044_v25 = vsub.f32 %v7042_v19, %v7043_v21 }
 0x2b0   : > { %9342 = vmatmul.mubr.f32.vlgmr.msra.gmra.mrb[8].mxu1 %v10707_v16  ;;  %9426 = vmatmul.mubr.f32.vlgmr.msra.gmra.mrb[4].mxu0 %v10709_v18 }
 0x2b1   : > { %9860 = vmatpush3.bf16.msra.mxu1 %v10727_v56  ;;  %9908 = vmatpush3.bf16.msra.mxu0 %v10727_v56 }
 0x2b2   : > { %9862 = vmatprep.subr.bf16.mxu1 %v10737_v12  ;;  %9910 = vmatprep.subr.bf16.mxu0 %v10737_v12 }
 0x2b3   : > { %9348 = vmatprep.mubr.f32.mxu1 %v10665_v0  ;;  %9432 = vmatprep.mubr.f32.mxu0 %v10667_v1 }
 0x2b8   : > { %9349 = vmatmul.mubr.f32.vlgmr.msra.gmra.mrb[8].mxu1 %v10707_v16  ;;  %9433 = vmatmul.mubr.f32.vlgmr.msra.gmra.mrb[4].mxu0 %v10709_v18 }
 0x2b9   : > { %9864 = vmatpush3.bf16.msra.mxu1 %v10737_v12  ;;  %9912 = vmatpush3.bf16.msra.mxu0 %v10737_v12 }
 0x2ba   : > { %9866 = vmatprep.subr.bf16.mxu1 %v9865_v31  ;;  %9914 = vmatprep.subr.bf16.mxu0 %v9865_v31 }
 0x2bb   : > { %9355 = vmatprep.mubr.f32.mxu1 %v10687_v9  ;;  %9439 = vmatprep.mubr.f32.mxu0 %v10685_v8 }
 0x2bc   : > { %9356 = vmatmul.mubr.f32.vlgmr.msra.gmra.mrb[10].mxu1 %v10733_v6 }
 0x2bd   : > { %9868 = vmatpush3.bf16.msra.mxu1 %v9865_v31  ;;  %9362 = vmatprep.mubr.f32.mxu1 %v10667_v1 }
 0x2be   : > { %9870 = vmatprep.subr.bf16.mxu1 %v10741_v22 }
 0x2c0   : > { %9440 = vmatmul.mubr.f32.vlgmr.msra.gmra.mrb[4].mxu0 %v10729_v61 }
 0x2c1   : > { %9916 = vmatpush3.bf16.msra.mxu0 %v9865_v31  ;;  %9446 = vmatprep.mubr.f32.mxu0 %v10665_v0 }
 0x2c2   : > { %9918 = vmatprep.subr.bf16.mxu0 %v10741_v22 }
 0x2c4   : > { %9363 = vmatmul.mubr.f32.vlgmr.msra.gmra.mrb[10].mxu1 %v10709_v18 }
 0x2c5   : > { %9872 = vmatpush3.bf16.msra.mxu1 %v10741_v22  ;;  %9369 = vmatprep.mubr.f32.mxu1 %v10673_v3  ;;  %v345_v3 = vld [vmem:[%s11001_s6 + $0x8] sm:$0xff] }
 0x2c6   : > { %9874 = vmatprep.subr.bf16.mxu1 %v10737_v12 }
 0x2c8   : > { %9447 = vmatmul.mubr.f32.vlgmr.msra.gmra.mrb[4].mxu0 %v10707_v16 }
 0x2c9   : > { %9920 = vmatpush3.bf16.msra.mxu0 %v10741_v22  ;;  %9453 = vmatprep.mubr.f32.mxu0 %v10670_v2  ;;  %v344_v2 = vld [vmem:[%s11001_s6] sm:$0xff] }
 0x2ca   : > { %9922 = vmatprep.subr.bf16.mxu0 %v10737_v12 }
 0x2cc   : > { %9370 = vmatmul.mubr.f32.vlgmr.msra.gmra.mrb[10].mxu1 %v10715_v27 }
 0x2cd   : > { %9876 = vmatpush3.bf16.msra.mxu1 %v10737_v12  ;;  %9376 = vmatprep.mubr.f32.mxu1 %v10679_v5 }
 0x2ce   : > { %9878 = vmatprep.subr.bf16.mxu1 %v10745_v28 }
 0x2d0   : > { %9454 = vmatmul.mubr.f32.vlgmr.msra.gmra.mrb[4].mxu0 %v10712_v23 }
 0x2d1   : > { %9924 = vmatpush3.bf16.msra.mxu0 %v10737_v12  ;;  %9460 = vmatprep.mubr.f32.mxu0 %v10676_v4  ;;  %v6439_v4 = vand.u32 4294901760, %v344_v2 }
 0x2d2   : > { %9926 = vmatprep.subr.bf16.mxu0 %v10745_v28 }
 0x2d3   : > { %v6527_v8 = vsub.f32 %v344_v2, %v6439_v4 }
 0x2d4   : > { %9377 = vmatmul.mubr.f32.vlgmr.msra.gmra.mrb[10].mxu1 %v10721_v41 }
 0x2d5   : > { %9880 = vmatpush3.bf16.msra.mxu1 %v10745_v28  ;;  %9383 = vmatprep.mubr.f32.mxu1 %v10667_v1 }
 0x2d6   : > { %9882 = vmatprep.subr.bf16.mxu1 %v10737_v12 }
 0x2d8   : > { %9461 = vmatmul.mubr.f32.vlgmr.msra.gmra.mrb[4].mxu0 %v10718_v38 }
 0x2d9   : > { %9928 = vmatpush3.bf16.msra.mxu0 %v10745_v28  ;;  %9467 = vmatprep.mubr.f32.mxu0 %v10665_v0  ;;  %v7045_v28 = vand.u32 4294901760, %v7044_v25 }
 0x2da   : > { %9930 = vmatprep.subr.bf16.mxu0 %v10737_v12 }
 0x2dc   : > { %9384 = vmatmul.mubr.f32.vlgmr.msra.gmra.mrb[10].mxu1 %v10709_v18 }
 0x2dd   : > { %9884 = vmatpush3.bf16.msra.mxu1 %v10737_v12  ;;  %9390 = vmatprep.mubr.f32.mxu1 %v10667_v1  ;;  %v6442_v1 = vand.u32 4294901760, %v345_v3 }
 0x2df   : > { %v10823_v5 = vpack.c.bf16 %v6442_v1, %v6439_v4  ;;  %v6534_v9 = vsub.f32 %v345_v3, %v6442_v1 }
 0x2e0   : > { %9468 = vmatmul.mubr.f32.vlgmr.msra.gmra.mrb[4].mxu0 %v10707_v16 }
 0x2e1   : > { %9932 = vmatpush3.bf16.msra.mxu0 %v10737_v12  ;;  %9474 = vmatprep.mubr.f32.mxu0 %v10665_v0  ;;  %v6528_v0 = vand.u32 4294901760, %v6527_v8  ;;  %v9941_v34 = vpack.c.bf16 %v6534_v9, %v6527_v8  ;;  %v8576_v12 = vld [vmem:[%s11001_s6 + $0x10] sm:$0xff] }
 0x2e2   : > { %9934 = vmatprep.subr.bf16.mxu1 %v10823_v5  ;;  %9982 = vmatprep.subr.bf16.mxu0 %v10823_v5  ;;  %v6947_v14 = vand.u32 4294901760, %v8576_v12 }
 0x2e4   : > { %9391 = vmatmul.mubr.f32.vlgmr.msra.gmra.mrb[10].mxu1 %v10709_v18  ;;  %v6529_v18 = vsub.f32 %v6527_v8, %v6528_v0  ;;  %v7035_v17 = vsub.f32 %v8576_v12, %v6947_v14  ;;  %v9957_v22 = vpack.c.bf16 %v6950_v15, %v6947_v14 }
 0x2e5   : > { %9936 = vmatpush3.bf16.msra.mxu1 %v10823_v5 }
 0x2e6   : > { %v6530_v27 = vand.u32 4294901760, %v6529_v18  ;;  %v7036_v20 = vand.u32 4294901760, %v7035_v17  ;;  %v9965_v30 = vpack.c.bf16 %v7042_v19, %v7035_v17 }
 0x2e8   : > { %9475 = vmatmul.mubr.f32.vlgmr.msra.gmra.mrb[4].mxu0 %v10707_v16  ;;  %v6535_v16 = vand.u32 4294901760, %v6534_v9  ;;  %v7037_v24 = vsub.f32 %v7035_v17, %v7036_v20  ;;  %v9973_v31 = vpack.c.bf16 %v7043_v21, %v7036_v20 }
 0x2e9   : > { %9984 = vmatpush3.bf16.msra.mxu0 %v10823_v5 }
 0x2ea   : > { %v6536_v23 = vsub.f32 %v6534_v9, %v6535_v16  ;;  %v10829_v35 = vpack.c.bf16 %v6535_v16, %v6528_v0  ;;  %v7038_v26 = vand.u32 4294901760, %v7037_v24 }
 0x2ec   : > { %v6537_v32 = vand.u32 4294901760, %v6536_v23  ;;  %v9961_v29 = vpack.c.bf16 %v7045_v28, %v7038_v26 }
 0x2ee   : > { %v9937_v33 = vpack.c.bf16 %v6537_v32, %v6530_v27 }
 0x2f0   : > { %9938 = vmatprep.subr.bf16.mxu1 %v9937_v33  ;;  %9986 = vmatprep.subr.bf16.mxu0 %v9937_v33 }
 0x38b   : > { %v9350_v36 = vpop.f32.mrb[8].mxu1 }
 0x38c   : > { %v4908_v37 = vpop.f32.mrb[9].mxu1 }
 0x3b7   : > { %v9392_v38 = vpop.f32.mrb[10].mxu1 }
 0x3b8   : > { %v5427_v39 = vsub.f32 %v9350_v36, %v9392_v38  ;;  %v5416_v40 = vpop.f32.mrb[11].mxu1 }
 0x3b9   : > { %v5426_v41 = vsub.f32 %v4908_v37, %v5416_v40 }
 0x3ba   : > { %v6436_v42 = vsel %vm349_vm0, %v5427_v39, 0 }
 0x3bb   : > { %v10832_v43 = vand.u32 4294901760, %v6436_v42  ;;  %v6433_v44 = vsel %vm349_vm0, %v5426_v41, 0  ;;  %v9476_v45 = vpop.f32.mrb[4].mxu0 }
 0x3bc   : > { %v10835_v46 = vand.u32 4294901760, %v6433_v44  ;;  %v6944_v47 = vsel %vm349_vm0, %v9476_v45, 0  ;;  %v6422_v48 = vpop.f32.mrb[5].mxu0 }
 0x3bd   : > { %v10839_v49 = vsub.f32 %v6436_v42, %v10832_v43  ;;  %v10841_v50 = vand.u32 4294901760, %v6944_v47  ;;  %v6941_v51 = vsel %vm349_vm0, %v6422_v48, 0 }
 0x3be   : > { %v10845_v52 = vsub.f32 %v6433_v44, %v10835_v46  ;;  %v10847_v53 = vand.u32 4294901760, %v6941_v51 }
 0x3bf   : > { %v10850_v54 = vand.u32 4294901760, %v10839_v49  ;;  %v10853_v55 = vsub.f32 %v6944_v47, %v10841_v50 }
 0x3c0   : > { %v10856_v56 = vsub.f32 %v6941_v51, %v10847_v53  ;;  %v10859_v57 = vand.u32 4294901760, %v10845_v52 }
 0x3c1   : > { %v10862_v58 = vand.u32 4294901760, %v10853_v55  ;;  %v6518_v59 = vsub.f32 %v10839_v49, %v10850_v54 }
 0x3c2   : > { %v6508_v60 = vsub.f32 %v10845_v52, %v10859_v57  ;;  %v10869_v61 = vand.u32 4294901760, %v10856_v56 }
 0x3c3   : > { %v7026_v62 = vsub.f32 %v10853_v55, %v10862_v58  ;;  %v10877_v7 = vand.u32 4294901760, %v6518_v59 }
 0x3c4   : > { %v10873_v63 = vand.u32 4294901760, %v6508_v60  ;;  %v7016_v6 = vsub.f32 %v10856_v56, %v10869_v61 }
 0x3c5   : > { %v7027_v11 = vand.u32 4294901760, %v7026_v62 }
 0x3c6   : > { %9481 = vmatprep.mubr.f32.mxu1 %v10873_v63  ;;  %v7017_v10 = vand.u32 4294901760, %v7016_v6 }
 0x3c7   : > { %9482 = vmatmul.mubr.f32.vlgmr.msra.gmra.mrb[12].mxu1 %v10877_v7 }
 0x3c8   : > { %9488 = vmatprep.mubr.f32.mxu1 %v10835_v46  ;;  %9565 = vmatprep.mubr.f32.mxu0 %v7017_v10 }
 0x3c9   : > { %9566 = vmatmul.mubr.f32.vlgmr.msra.gmra.mrb[6].mxu0 %v7027_v11  ;;  %9940 = vmatpush3.bf16.msra.mxu1 %v9937_v33 }
 0x3ca   : > { %9572 = vmatprep.mubr.f32.mxu0 %v10847_v53  ;;  %9988 = vmatpush3.bf16.msra.mxu0 %v9937_v33 }
 0x3cb   : > { %9942 = vmatprep.subr.bf16.mxu1 %v9941_v34  ;;  %9990 = vmatprep.subr.bf16.mxu0 %v9941_v34 }
 0x3cf   : > { %9489 = vmatmul.mubr.f32.vlgmr.msra.gmra.mrb[12].mxu1 %v10832_v43 }
 0x3d0   : > { %9495 = vmatprep.mubr.f32.mxu1 %v10845_v52  ;;  %9944 = vmatpush3.bf16.msra.mxu1 %v9941_v34 }
 0x3d1   : > { %9573 = vmatmul.mubr.f32.vlgmr.msra.gmra.mrb[6].mxu0 %v10841_v50  ;;  %9946 = vmatprep.subr.bf16.mxu1 %v10823_v5 }
 0x3d2   : > { %9579 = vmatprep.mubr.f32.mxu0 %v10856_v56  ;;  %9992 = vmatpush3.bf16.msra.mxu0 %v9941_v34 }
 0x3d3   : > { %9994 = vmatprep.subr.bf16.mxu0 %v10823_v5 }
 0x3d7   : > { %9496 = vmatmul.mubr.f32.vlgmr.msra.gmra.mrb[12].mxu1 %v10839_v49 }
 0x3d8   : > { %9502 = vmatprep.mubr.f32.mxu1 %v10859_v57  ;;  %9948 = vmatpush3.bf16.msra.mxu1 %v10823_v5 }
 0x3d9   : > { %9580 = vmatmul.mubr.f32.vlgmr.msra.gmra.mrb[6].mxu0 %v10853_v55  ;;  %9950 = vmatprep.subr.bf16.mxu1 %v10829_v35 }
 0x3da   : > { %9586 = vmatprep.mubr.f32.mxu0 %v10869_v61  ;;  %9996 = vmatpush3.bf16.msra.mxu0 %v10823_v5 }
 0x3db   : > { %9998 = vmatprep.subr.bf16.mxu0 %v10829_v35 }
 0x3df   : > { %9503 = vmatmul.mubr.f32.vlgmr.msra.gmra.mrb[12].mxu1 %v10850_v54 }
 0x3e0   : > { %9509 = vmatprep.mubr.f32.mxu1 %v10835_v46  ;;  %9952 = vmatpush3.bf16.msra.mxu1 %v10829_v35 }
 0x3e1   : > { %9587 = vmatmul.mubr.f32.vlgmr.msra.gmra.mrb[6].mxu0 %v10862_v58  ;;  %9954 = vmatprep.subr.bf16.mxu1 %v10823_v5 }
 0x3e2   : > { %9593 = vmatprep.mubr.f32.mxu0 %v10847_v53  ;;  %10000 = vmatpush3.bf16.msra.mxu0 %v10829_v35 }
 0x3e3   : > { %10002 = vmatprep.subr.bf16.mxu0 %v10823_v5 }
 0x3e7   : > { %9510 = vmatmul.mubr.f32.vlgmr.msra.gmra.mrb[12].mxu1 %v10832_v43 }
 0x3e8   : > { %9516 = vmatprep.mubr.f32.mxu1 %v10835_v46  ;;  %9956 = vmatpush3.bf16.msra.mxu1 %v10823_v5 }
 0x3e9   : > { %9594 = vmatmul.mubr.f32.vlgmr.msra.gmra.mrb[6].mxu0 %v10841_v50  ;;  %9958 = vmatprep.subr.bf16.mxu1 %v9957_v22 }
 0x3ea   : > { %9600 = vmatprep.mubr.f32.mxu0 %v10847_v53  ;;  %10004 = vmatpush3.bf16.msra.mxu0 %v10823_v5 }
 0x3eb   : > { %10006 = vmatprep.subr.bf16.mxu0 %v9957_v22 }
 0x3ef   : > { %9517 = vmatmul.mubr.f32.vlgmr.msra.gmra.mrb[12].mxu1 %v10832_v43 }
 0x3f0   : > { %9960 = vmatpush3.bf16.msra.mxu1 %v9957_v22  ;;  %9523 = vmatprep.mubr.f32.mxu1 %v7017_v10 }
 0x3f1   : > { %9601 = vmatmul.mubr.f32.vlgmr.msra.gmra.mrb[6].mxu0 %v10841_v50  ;;  %9962 = vmatprep.subr.bf16.mxu1 %v9961_v29 }
 0x3f2   : > { %9607 = vmatprep.mubr.f32.mxu0 %v10873_v63  ;;  %10008 = vmatpush3.bf16.msra.mxu0 %v9957_v22 }
 0x3f3   : > { %9524 = vmatmul.mubr.f32.vlgmr.msra.gmra.mrb[14].mxu1 %v7027_v11  ;;  %10010 = vmatprep.subr.bf16.mxu0 %v9961_v29 }
 0x3f4   : > { %9530 = vmatprep.mubr.f32.mxu1 %v10847_v53  ;;  %9964 = vmatpush3.bf16.msra.mxu1 %v9961_v29 }
 0x3f5   : > { %9966 = vmatprep.subr.bf16.mxu1 %v9965_v30 }
 0x3f9   : > { %9608 = vmatmul.mubr.f32.vlgmr.msra.gmra.mrb[6].mxu0 %v10877_v7 }
 0x3fa   : > { %9614 = vmatprep.mubr.f32.mxu0 %v10835_v46  ;;  %10012 = vmatpush3.bf16.msra.mxu0 %v9961_v29 }
 0x3fb   : > { %9531 = vmatmul.mubr.f32.vlgmr.msra.gmra.mrb[14].mxu1 %v10841_v50  ;;  %10014 = vmatprep.subr.bf16.mxu0 %v9965_v30 }
 0x3fc   : > { %9537 = vmatprep.mubr.f32.mxu1 %v10856_v56  ;;  %9968 = vmatpush3.bf16.msra.mxu1 %v9965_v30 }
 0x3fd   : > { %9970 = vmatprep.subr.bf16.mxu1 %v9957_v22 }
 0x401   : > { %9615 = vmatmul.mubr.f32.vlgmr.msra.gmra.mrb[6].mxu0 %v10832_v43 }
 0x402   : > { %9621 = vmatprep.mubr.f32.mxu0 %v10845_v52  ;;  %10016 = vmatpush3.bf16.msra.mxu0 %v9965_v30 }
 0x403   : > { %9538 = vmatmul.mubr.f32.vlgmr.msra.gmra.mrb[14].mxu1 %v10853_v55  ;;  %10018 = vmatprep.subr.bf16.mxu0 %v9957_v22 }
 0x404   : > { %9544 = vmatprep.mubr.f32.mxu1 %v10869_v61  ;;  %9972 = vmatpush3.bf16.msra.mxu1 %v9957_v22 }
 0x405   : > { %9974 = vmatprep.subr.bf16.mxu1 %v9973_v31 }
 0x409   : > { %9622 = vmatmul.mubr.f32.vlgmr.msra.gmra.mrb[6].mxu0 %v10839_v49 }
 0x40a   : > { %9628 = vmatprep.mubr.f32.mxu0 %v10859_v57  ;;  %10020 = vmatpush3.bf16.msra.mxu0 %v9957_v22 }
 0x40b   : > { %9545 = vmatmul.mubr.f32.vlgmr.msra.gmra.mrb[14].mxu1 %v10862_v58  ;;  %10022 = vmatprep.subr.bf16.mxu0 %v9973_v31 }
 0x40c   : > { %9551 = vmatprep.mubr.f32.mxu1 %v10847_v53  ;;  %9976 = vmatpush3.bf16.msra.mxu1 %v9973_v31 }
 0x40d   : > { %9978 = vmatprep.subr.bf16.mxu1 %v9957_v22 }
 0x411   : > { %9629 = vmatmul.mubr.f32.vlgmr.msra.gmra.mrb[6].mxu0 %v10850_v54 }
 0x412   : > { %9635 = vmatprep.mubr.f32.mxu0 %v10835_v46  ;;  %10024 = vmatpush3.bf16.msra.mxu0 %v9973_v31 }
 0x413   : > { %9552 = vmatmul.mubr.f32.vlgmr.msra.gmra.mrb[14].mxu1 %v10841_v50  ;;  %10026 = vmatprep.subr.bf16.mxu0 %v9957_v22 }
 0x414   : > { %9558 = vmatprep.mubr.f32.mxu1 %v10847_v53  ;;  %9980 = vmatpush3.bf16.msra.mxu1 %v9957_v22 }
 0x419   : > { %9636 = vmatmul.mubr.f32.vlgmr.msra.gmra.mrb[6].mxu0 %v10832_v43 }
 0x41a   : > { %9642 = vmatprep.mubr.f32.mxu0 %v10835_v46  ;;  %10028 = vmatpush3.bf16.msra.mxu0 %v9957_v22 }
 0x41b   : > { %9559 = vmatmul.mubr.f32.vlgmr.msra.gmra.mrb[14].mxu1 %v10841_v50 }
 0x421   : > { %9643 = vmatmul.mubr.f32.vlgmr.msra.gmra.mrb[6].mxu0 %v10832_v43 }
 0x4c2   : > { %v9518_v2 = vpop.f32.mrb[12].mxu1 }
 0x4c3   : > { %v6930_v3 = vpop.f32.mrb[13].mxu1 }
 0x4ee   : > { %v9560_v4 = vpop.f32.mrb[14].mxu1 }
 0x4ef   : > { %v7449_v1 = vsub.f32 %v9518_v2, %v9560_v4  ;;  %v7438_v5 = vpop.f32.mrb[15].mxu1 }
 0x4f0   : > { %v7448_v8 = vsub.f32 %v6930_v3, %v7438_v5 }
 0x4f1   : > { %8455 = vst.msk [vmem:[%s301_s17 + $0x8] sm:$0xff] %vm349_vm0, %v7449_v1 }
 0x4f2   : > { %8454 = vst.msk [vmem:[%s301_s17] sm:$0xff] %vm349_vm0, %v7448_v8 }
 0x4f4   : > { %v9644_v9 = vpop.f32.mrb[6].mxu0 }
 0x4f5   : > { %8579 = vst.msk [vmem:[%s301_s17 + $0x18] sm:$0xff] %vm349_vm0, %v9644_v9  ;;  %v8444_v0 = vpop.f32.mrb[7].mxu0 }
 0x4f6   : > { %8578 = vst.msk [vmem:[%s301_s17 + $0x10] sm:$0xff] %vm349_vm0, %v8444_v0 }
 0x4f7   : > { %10251 = shalt.err (!%p10248_p3)
}
 0x4f8   : > { %s10252_s13 = scalar_lea.hbm %s10950_s21, 512  ;;  %s10256_s16 = scalar_lea.hbm %s11002_s7, 1024 }
 0x4f9   : > { %p10253_p4 = scmp.ne.s32.totalorder %s10950_s21, %s10252_s13  ;;  %p10257_p9 = scmp.lt.u32.totalorder %s10950_s21, %s11002_s7 }
 0x4fa   : > { %p10258_p10 = scmp.lt.u32.totalorder %s10256_s16, %s10252_s13  ;;  %p10260_p12 = scmp.lt.u32.totalorder %s10252_s13, %s10950_s21 }
 0x4fb   : > { %p10254_p7 = pnand %p10253_p4, %p10383_p5 }
 0x4fc   : > { %p10259_p11 = por %p10258_p10, %p10257_p9 }
 0x4fd   : > { %p10255_p8 = pneg %p10254_p7 }
 0x4fe   : > { %p10261_p13 = por %p10260_p12, %p10259_p11 }
 0x500   : > { %p10262_p0 = pnand %p10261_p13, %p10255_p8 }
 0x502   : > { %10265 = shalt.err (!%p10262_p0)
}
 0x503   : > { %s10303_s20 = smov 128   ;;  %s10304_s22 = smov 8  }
 0x504   : > { %10197 = dma.vmem_to_hbm [thread:$0]  (%p10383_p5), %s10945_s18, 512, %s10950_s21, %s10954_s23, %s10303_s20, %s10303_s20, %s10304_s22  }
 0x505 PF: > { %p10203_p1 = scmp.ge.s32.totalorder %s10300_s27, 2  ;;  %s8488_s28 = sand.u32 1, %s10288_s24  }
 0x506   : > { %s8489_s29 = scalar_lea.sflag [#allocation3], %s8488_s28 }
 0x507   : > { %p10200_p2 = pnand %p10203_p1, %p10387_p6 }
 0x509   : > { %10283 = dma.done.wait (!%p10200_p2), %s8489_s29, 512  }
 0x50a   : > { %10285 = vsyncadd (!%p10200_p2), %s8489_s29, 4294966784  ;;  %p17_p3 = scmp.ge.s32.totalorder %s10370_s30, 4   ;;  %s11005_s24 = smov %s10292_s25 }
 0x50b   : > { %s11006_s25 = smov %s10296_s26  ;;  %s11007_s26 = smov %s10381_s10 }
 0x50c   : > { %s11008_s27 = smov %s10370_s30  ;;  %19 = sbr.rel (!%p17_p3) target bundleno = 3 (0x3), region = 94 }
 0x513   :  { %8494 = vsyncpa [#allocation3], 1 }
 0x514   :  { %8496 = vsyncpa [#allocation3 + $0x1], 1 }

</bundles_post_ra>
